<compile_context>
chip_gen: v6e
topology: v6e:2x2x1
jax: 0.10.0
libtpu: 0.0.40
codegen_flags: <defaults>
</compile_context>

<pallas_src>
import jax
import jax.numpy as jnp
from jax.experimental import pallas as pl
from jax.experimental.pallas import tpu as pltpu


_VMEM_LIMIT = 32 * 1024 * 1024   # fits v5e/v6e/v7x scoped-VMEM budgets
_TM_CAP = 2048                   # lane-tile cap (multiple of 128)


# ----------------------------- Pallas kernels ------------------------------

def _gemm_stats_kernel(a_ref, b_ref, pre_ref, sum_ref, sq_ref):
    """(Cout,K)bf16 @ (K,TM)bf16 -> f32 pre-activation + per-channel partial
    sum / sum-of-squares (broadcast over the 128-lane stats block)."""
    acc = jnp.dot(a_ref[...], b_ref[...], preferred_element_type=jnp.float32)
    pre_ref[...] = acc
    sum_ref[...] = jnp.broadcast_to(
        jnp.sum(acc, axis=1, keepdims=True), sum_ref.shape)
    sq_ref[...] = jnp.broadcast_to(
        jnp.sum(acc * acc, axis=1, keepdims=True), sq_ref.shape)


def _affine_relu_kernel(x_ref, scale_ref, shift_ref, o_ref):
    """Per-channel affine (BatchNorm) + ReLU.  Channel axis = sublanes."""
    o_ref[...] = jnp.maximum(x_ref[...] * scale_ref[...] + shift_ref[...], 0.0)


def _gemm_bias_tanh_kernel(a_ref, b_ref, bias_ref, o_ref):
    """Final layer: matmul + bias + tanh fused in one pass (no BN stats)."""
    acc = jnp.dot(a_ref[...], b_ref[...], preferred_element_type=jnp.float32)
    o_ref[...] = jnp.tanh(acc + bias_ref[...])


def _choose_tm(m, cap=_TM_CAP):
    """Largest lane tile: full M if small/odd, else a 128-multiple divisor."""
    if m <= cap or m % 128 != 0:
        return m
    t = (cap // 128) * 128
    while m % t:
        t -= 128
    return t


def _mosaic_params():
    return pltpu.CompilerParams(
        dimension_semantics=("parallel", "parallel"),
        vmem_limit_bytes=_VMEM_LIMIT)


def fused_gemm_stats(a_stack, b_stack):
    """a_stack: (P, Cout, K) bf16, b_stack: (P, K, M) bf16.

    Returns pre: (P, Cout, M) f32, psum/psq: (P, Cout, nb*128) f32 partials.
    """
    p, cout, kd = a_stack.shape
    _, _, m = b_stack.shape
    tm = _choose_tm(m)
    nb = m // tm
    return pl.pallas_call(
        _gemm_stats_kernel,
        out_shape=(jax.ShapeDtypeStruct((p, cout, m), jnp.float32),
                   jax.ShapeDtypeStruct((p, cout, nb * 128), jnp.float32),
                   jax.ShapeDtypeStruct((p, cout, nb * 128), jnp.float32)),
        grid=(p, nb),
        in_specs=[pl.BlockSpec((None, cout, kd), lambda ph, i: (ph, 0, 0)),
                  pl.BlockSpec((None, kd, tm), lambda ph, i: (ph, 0, i))],
        out_specs=(pl.BlockSpec((None, cout, tm), lambda ph, i: (ph, 0, i)),
                   pl.BlockSpec((None, cout, 128), lambda ph, i: (ph, 0, i)),
                   pl.BlockSpec((None, cout, 128), lambda ph, i: (ph, 0, i))),
        compiler_params=_mosaic_params(),
    )(a_stack, b_stack)


def affine_relu(pre_stack, scale, shift):
    """pre_stack: (P, Cout, M) f32; scale/shift: (Cout,) f32."""
    p, cout, m = pre_stack.shape
    tm = _choose_tm(m)
    nb = m // tm
    return pl.pallas_call(
        _affine_relu_kernel,
        out_shape=jax.ShapeDtypeStruct((p, cout, m), jnp.float32),
        grid=(p, nb),
        in_specs=[pl.BlockSpec((None, cout, tm), lambda ph, i: (ph, 0, i)),
                  pl.BlockSpec((cout, 1), lambda ph, i: (0, 0)),
                  pl.BlockSpec((cout, 1), lambda ph, i: (0, 0))],
        out_specs=pl.BlockSpec((None, cout, tm), lambda ph, i: (ph, 0, i)),
        compiler_params=_mosaic_params(),
    )(pre_stack, scale.reshape(cout, 1).astype(jnp.float32),
      shift.reshape(cout, 1).astype(jnp.float32))


def gemm_bias_tanh(a_stack, b_stack, bias):
    """Final-layer fused GEMM + bias + tanh. Returns (P, Cout, M) f32."""
    p, cout, kd = a_stack.shape
    _, _, m = b_stack.shape
    tm = _choose_tm(m)
    nb = m // tm
    return pl.pallas_call(
        _gemm_bias_tanh_kernel,
        out_shape=jax.ShapeDtypeStruct((p, cout, m), jnp.float32),
        grid=(p, nb),
        in_specs=[pl.BlockSpec((None, cout, kd), lambda ph, i: (ph, 0, 0)),
                  pl.BlockSpec((None, kd, tm), lambda ph, i: (ph, 0, i)),
                  pl.BlockSpec((cout, 1), lambda ph, i: (0, 0))],
        out_specs=pl.BlockSpec((None, cout, tm), lambda ph, i: (ph, 0, i)),
        compiler_params=_mosaic_params(),
    )(a_stack, b_stack, bias.reshape(cout, 1).astype(jnp.float32))


# ------------- ConvTranspose2d via sub-pixel (phase) GEMM lowering ----------
#
# ConvTranspose(k, s, p) == for each output phase (a, b) in [0,s)^2 a small
# stride-1 correlation of the *un-dilated* input with (k/s)^2 taps of the
# spatially-flipped kernel.  Each phase becomes one (Cout, Cin*(k/s)^2) x
# (Cin*(k/s)^2, N*Hph*Wph) GEMM; s=1 degenerates to the standard lowering.

def _phase_taps(k, s, p):
    """Per output phase: list of (input offset, original kernel index)."""
    pp = k - 1 - p
    assert k % s == 0
    phases = []
    for a in range(s):
        taps = []
        for kh in range(k):
            if (a + kh - pp) % s == 0:
                taps.append(((a + kh - pp) // s, k - 1 - kh))
        phases.append(taps)
    return phases


def make_phase_weight(w, s, p):
    """PyTorch ConvTranspose2d weight (Cin, Cout, K, K) ->
    stacked per-phase GEMM matrices (s*s, Cout, Cin*(K/s)^2), bf16."""
    cin, cout, k, _ = w.shape
    taps = _phase_taps(k, s, p)
    t = k // s
    mats = []
    for ta in taps:
        for tb in taps:
            kh = jnp.array([wi for (_, wi) in ta])
            kw = jnp.array([wi for (_, wi) in tb])
            wsel = w[:, :, kh, :][:, :, :, kw]          # (Cin, Cout, T, T)
            mats.append(wsel.transpose(1, 0, 2, 3).reshape(cout, cin * t * t))
    return jnp.stack(mats, axis=0).astype(jnp.bfloat16)


def build_phase_patches(x, k, s, p):
    """x: (Cin, N, H, W) -> patches (s*s, Cin*(K/s)^2, N*Hph*Wph) bf16.

    TODO(synk): the shifted-window extraction is XLA glue; folding it into the
    GEMM kernel via manual DMA would remove the remaining duplicated patch
    traffic ((K/s)^2 copies of the activation).
    """
    cin, n, h, w = x.shape
    taps = _phase_taps(k, s, p)
    ho = (h - 1) * s - 2 * p + k
    wo = (w - 1) * s - 2 * p + k
    assert ho % s == 0 and wo % s == 0, "unsupported geometry for phase split"
    hph, wph = ho // s, wo // s
    offs = [o for ph in taps for (o, _) in ph]
    pad_lo = max(0, -min(offs))
    pad_hi_h = max(0, (hph - 1) + max(offs) - (h - 1))
    pad_hi_w = max(0, (wph - 1) + max(offs) - (w - 1))
    xpad = jnp.pad(x, ((0, 0), (0, 0), (pad_lo, pad_hi_h), (pad_lo, pad_hi_w)))
    t = k // s
    phases = []
    for ta in taps:                 # output row phase a
        for tb in taps:             # output col phase b
            slabs = []
            for (oh, _) in ta:
                for (ow, _) in tb:
                    slabs.append(xpad[:, :,
                                      pad_lo + oh: pad_lo + oh + hph,
                                      pad_lo + ow: pad_lo + ow + wph])
            pt = jnp.stack(slabs, axis=1)               # (Cin, T*T, N, Hph, Wph)
            phases.append(pt.reshape(cin * t * t, n * hph * wph))
    patches = jnp.stack(phases, axis=0).astype(jnp.bfloat16)
    return patches, (n, hph, wph)


def assemble_phases(y_stack, n, hph, wph, s):
    """(s*s, Cout, N*Hph*Wph) phase results -> (Cout, N, s*Hph, s*Wph)."""
    _, cout, _ = y_stack.shape
    y = y_stack.reshape(s, s, cout, n, hph, wph)
    y = y.transpose(2, 3, 4, 0, 5, 1)       # (Cout, N, Hph, a, Wph, b)
    return y.reshape(cout, n, hph * s, wph * s)


def gen_block(x_cnhw, wq, gamma, beta, k, s, p, eps=1e-5):
    """ConvTranspose2d(bias=False) -> BatchNorm2d (training stats) -> ReLU."""
    patches, (n, hph, wph) = build_phase_patches(x_cnhw, k, s, p)
    pre, psum, psq = fused_gemm_stats(wq, patches)
    nphase, cout, m = pre.shape
    cnt = float(nphase * m)                                  # = N*Ho*Wo
    sums = psum.reshape(nphase, cout, -1, 128)[..., 0].sum(axis=(0, 2))
    sqs = psq.reshape(nphase, cout, -1, 128)[..., 0].sum(axis=(0, 2))
    mean = sums / cnt
    var = jnp.maximum(sqs / cnt - mean * mean, 0.0)          # biased (PyTorch BN)
    scale = gamma / jnp.sqrt(var + eps)
    shift = beta - mean * scale
    y = affine_relu(pre, scale, shift)
    return assemble_phases(y, n, hph, wph, s)


def final_layer(x_cnhw, wq, b, k, s, p):
    """ConvTranspose2d(bias=True) -> Tanh (bias+tanh fused in the GEMM)."""
    patches, (n, hph, wph) = build_phase_patches(x_cnhw, k, s, p)
    y = gemm_bias_tanh(wq, patches, b)
    return assemble_phases(y, n, hph, wph, s)


# ------------------------------- Generator ---------------------------------

_LAYER_CFG = [(4, 1, 0), (4, 2, 1), (4, 2, 1), (4, 2, 1)]   # (K, stride, pad)
_FINAL_CFG = (4, 2, 1)


def init_generator_params(key, z_dim, channels_img, features_g, num_classes,
                          embed_size):
    keys = jax.random.split(key, 8)
    std = 0.02

    def w_init(k, shape):
        return (std * jax.random.normal(k, shape)).astype(jnp.float32)

    chans = [(z_dim + embed_size, features_g * 16),
             (features_g * 16, features_g * 8),
             (features_g * 8, features_g * 4),
             (features_g * 4, features_g * 2)]
    blocks = []
    for i, ((cin, cout), (kk, s, p)) in enumerate(zip(chans, _LAYER_CFG)):
        w = w_init(keys[i], (cin, cout, kk, kk))        # ConvTranspose2d weight
        blocks.append(dict(
            w=w,                                        # f32 (reference only)
            wq=make_phase_weight(w, s, p),              # precomputed bf16 GEMM mats
            gamma=jnp.ones((cout,), jnp.float32),
            beta=jnp.zeros((cout,), jnp.float32)))

    fk, fs, fp = _FINAL_CFG
    final_w = w_init(keys[4], (features_g * 2, channels_img, fk, fk))
    final_b = w_init(keys[5], (channels_img,))
    embed_w = w_init(keys[6], (num_classes, embed_size))   # nn.Embedding weight

    return dict(blocks=blocks,
                final_w=final_w,
                final_wq=make_phase_weight(final_w, fs, fp),
                final_b=final_b,
                embed=embed_w)


def generator_forward(params, x, labels):
    # embedding lookup + concat along channel dim (NCHW), then go to CNHW.
    emb = params["embed"][labels][:, :, None, None]          # (N, E, 1, 1)
    x = jnp.concatenate([x.astype(jnp.float32), emb], axis=1)
    h = x.transpose(1, 0, 2, 3)                              # (Cin, N, H, W)

    for blk, (kk, s, p) in zip(params["blocks"], _LAYER_CFG):
        h = gen_block(h, blk["wq"], blk["gamma"], blk["beta"], kk, s, p)

    fk, fs, fp = _FINAL_CFG
    h = final_layer(h, params["final_wq"], params["final_b"], fk, fs, fp)
    return h.transpose(1, 0, 2, 3)                           # back to NCHW


# ------------------------- pure-JAX f32 reference ---------------------------

def _ref_conv_transpose(x, w, s, p):
    kk = w.shape[-1]
    wflip = jnp.transpose(w[:, :, ::-1, ::-1], (1, 0, 2, 3))  # (Cout, Cin, K, K)
    return jax.lax.conv_general_dilated(
        x, wflip, window_strides=(1, 1),
        padding=[(kk - 1 - p, kk - 1 - p)] * 2,
        lhs_dilation=(s, s),
        dimension_numbers=("NCHW", "OIHW", "NCHW"))


def reference_forward(params, x, labels, eps=1e-5):
    emb = params["embed"][labels][:, :, None, None]
    h = jnp.concatenate([x.astype(jnp.float32), emb], axis=1)
    for blk, (kk, s, p) in zip(params["blocks"], _LAYER_CFG):
        pre = _ref_conv_transpose(h, blk["w"], s, p)
        mean = pre.mean(axis=(0, 2, 3), keepdims=True)
        var = ((pre - mean) ** 2).mean(axis=(0, 2, 3), keepdims=True)
        h = jnp.maximum(
            (pre - mean) / jnp.sqrt(var + eps)
            * blk["gamma"][None, :, None, None]
            + blk["beta"][None, :, None, None], 0.0)
    fk, fs, fp = _FINAL_CFG
    pre = (_ref_conv_transpose(h, params["final_w"], fs, fp)
           + params["final_b"][None, :, None, None])
    return jnp.tanh(pre)


# --------------------------------- main -------------------------------------

if __name__ == "__main__":
    # Small, shape-consistent config: z (N, z_dim, 1, 1) -> image (N, C, 64, 64)
    z_dim, channels_img, features_g = 8, 3, 4
    num_classes, img_size, embed_size = 5, 64, 8
    batch = 2

    key = jax.random.PRNGKey(0)
    k_params, k_x, k_lbl = jax.random.split(key, 3)

    params = init_generator_params(k_params, z_dim, channels_img, features_g,
                                   num_classes, embed_size)
    x = jax.random.normal(k_x, (batch, z_dim, 1, 1), dtype=jnp.float32)
    labels = jax.random.randint(k_lbl, (batch,), 0, num_classes,
                                dtype=jnp.int32)

    out = jax.jit(generator_forward)(params, x, labels)
    out = jax.block_until_ready(out)

    assert out.shape == (batch, channels_img, img_size, img_size), out.shape
    assert bool(jnp.all(jnp.isfinite(out)))
    assert bool(jnp.all(jnp.abs(out) <= 1.0 + 1e-6))          # tanh range

    # Cross-check against a pure-JAX f32 reference (bf16 GEMM -> loose tol).
    ref = jax.jit(reference_forward)(params, x, labels)
    err = float(jnp.max(jnp.abs(out - ref)))
    assert err < 7.5e-2, f"max abs diff vs reference = {err}"

    print("KERNEL_OK")
</pallas_src>

<mosaic_0001>
module attributes {stable_mosaic.version = 11 : i64} {
  func.func @_gemm_stats_kernel(%arg0: i32, %arg1: i32, %arg2: memref<1x64x256xbf16, #tpu.memory_space<vmem>>, %arg3: memref<1x256x32xbf16, #tpu.memory_space<vmem>>, %arg4: memref<1x64x32xf32, #tpu.memory_space<vmem>>, %arg5: memref<1x64x128xf32, #tpu.memory_space<vmem>>, %arg6: memref<1x64x128xf32, #tpu.memory_space<vmem>>) attributes {dimension_semantics = [#tpu.dimension_semantics<parallel>, #tpu.dimension_semantics<parallel>], iteration_bounds = array<i64: 1, 1>, scalar_prefetch = 0 : i64, scratch_operands = 0 : i64, tpu.core_type = #tpu.core_type<tc>, window_params = [{transform_indices = @transform_0, window_bounds = array<i64: 1, 64, 256>}, {transform_indices = @transform_1, window_bounds = array<i64: 1, 256, 32>}, {transform_indices = @transform_2, window_bounds = array<i64: 1, 64, 32>}, {transform_indices = @transform_3, window_bounds = array<i64: 1, 64, 128>}, {transform_indices = @transform_4, window_bounds = array<i64: 1, 64, 128>}]} {
    %c0 = arith.constant 0 : index
    %c0_0 = arith.constant 0 : index
    %c0_1 = arith.constant 0 : index
    %0 = vector.load %arg2[%c0, %c0_0, %c0_1] : memref<1x64x256xbf16, #tpu.memory_space<vmem>>, vector<1x64x256xbf16>
    %1 = vector.shape_cast %0 : vector<1x64x256xbf16> to vector<64x256xbf16>
    %c0_2 = arith.constant 0 : index
    %c0_3 = arith.constant 0 : index
    %c0_4 = arith.constant 0 : index
    %2 = vector.load %arg3[%c0_2, %c0_3, %c0_4] : memref<1x256x32xbf16, #tpu.memory_space<vmem>>, vector<1x256x32xbf16>
    %3 = vector.shape_cast %2 : vector<1x256x32xbf16> to vector<256x32xbf16>
    %cst = arith.constant dense<0.000000e+00> : vector<64x32xf32>
    %4 = tpu.matmul %1, %3, %cst {dimension_numbers = #tpu.dot_dimension_numbers<[1], [0], [0], [1], [0, 0, 1, 1], [], []>} : vector<64x256xbf16>, vector<256x32xbf16>, vector<64x32xf32> -> vector<64x32xf32>
    %c0_5 = arith.constant 0 : index
    %c0_6 = arith.constant 0 : index
    %c0_7 = arith.constant 0 : index
    %5 = vector.load %arg4[%c0_5, %c0_6, %c0_7] : memref<1x64x32xf32, #tpu.memory_space<vmem>>, vector<1x64x32xf32>
    %6 = vector.shape_cast %5 : vector<1x64x32xf32> to vector<64x32xf32>
    %7 = vector.shape_cast %4 : vector<64x32xf32> to vector<1x64x32xf32>
    tpu.vector_store %arg4[%c0_5, %c0_6, %c0_7], %7 {strides = array<i32>} : memref<1x64x32xf32, #tpu.memory_space<vmem>>, vector<1x64x32xf32>,
    %cst_8 = arith.constant dense<0.000000e+00> : vector<64xf32>
    %8 = vector.multi_reduction <add>, %4, %cst_8 [1] : vector<64x32xf32> to vector<64xf32>
    %9 = vector.shape_cast %8 : vector<64xf32> to vector<64x1xf32>
    %10 = vector.shape_cast %9 : vector<64x1xf32> to vector<64x1xf32>
    %11 = vector.broadcast %10 : vector<64x1xf32> to vector<64x128xf32>
    %c0_9 = arith.constant 0 : index
    %c0_10 = arith.constant 0 : index
    %c0_11 = arith.constant 0 : index
    %12 = vector.load %arg5[%c0_9, %c0_10, %c0_11] : memref<1x64x128xf32, #tpu.memory_space<vmem>>, vector<1x64x128xf32>
    %13 = vector.shape_cast %12 : vector<1x64x128xf32> to vector<64x128xf32>
    %14 = vector.shape_cast %11 : vector<64x128xf32> to vector<1x64x128xf32>
    tpu.vector_store %arg5[%c0_9, %c0_10, %c0_11], %14 {strides = array<i32>} : memref<1x64x128xf32, #tpu.memory_space<vmem>>, vector<1x64x128xf32>,
    %15 = arith.mulf %4, %4 : vector<64x32xf32>
    %cst_12 = arith.constant dense<0.000000e+00> : vector<64xf32>
    %16 = vector.multi_reduction <add>, %15, %cst_12 [1] : vector<64x32xf32> to vector<64xf32>
    %17 = vector.shape_cast %16 : vector<64xf32> to vector<64x1xf32>
    %18 = vector.shape_cast %17 : vector<64x1xf32> to vector<64x1xf32>
    %19 = vector.broadcast %18 : vector<64x1xf32> to vector<64x128xf32>
    %c0_13 = arith.constant 0 : index
    %c0_14 = arith.constant 0 : index
    %c0_15 = arith.constant 0 : index
    %20 = vector.load %arg6[%c0_13, %c0_14, %c0_15] : memref<1x64x128xf32, #tpu.memory_space<vmem>>, vector<1x64x128xf32>
    %21 = vector.shape_cast %20 : vector<1x64x128xf32> to vector<64x128xf32>
    %22 = vector.shape_cast %19 : vector<64x128xf32> to vector<1x64x128xf32>
    tpu.vector_store %arg6[%c0_13, %c0_14, %c0_15], %22 {strides = array<i32>} : memref<1x64x128xf32, #tpu.memory_space<vmem>>, vector<1x64x128xf32>,
    return
  }
  func.func @transform_0(%arg0: i32, %arg1: i32) -> (i32, i32, i32) {
    %c0_i32 = arith.constant 0 : i32
    %c0_i32_0 = arith.constant 0 : i32
    %c0_i32_1 = arith.constant 0 : i32
    return %arg0, %c0_i32, %c0_i32_0 : i32, i32, i32
  }
  func.func @transform_1(%arg0: i32, %arg1: i32) -> (i32, i32, i32) {
    %c0_i32 = arith.constant 0 : i32
    %c0_i32_0 = arith.constant 0 : i32
    return %arg0, %c0_i32, %arg1 : i32, i32, i32
  }
  func.func @transform_2(%arg0: i32, %arg1: i32) -> (i32, i32, i32) {
    %c0_i32 = arith.constant 0 : i32
    %c0_i32_0 = arith.constant 0 : i32
    return %arg0, %c0_i32, %arg1 : i32, i32, i32
  }
  func.func @transform_3(%arg0: i32, %arg1: i32) -> (i32, i32, i32) {
    %c0_i32 = arith.constant 0 : i32
    %c0_i32_0 = arith.constant 0 : i32
    return %arg0, %c0_i32, %arg1 : i32, i32, i32
  }
  func.func @transform_4(%arg0: i32, %arg1: i32) -> (i32, i32, i32) {
    %c0_i32 = arith.constant 0 : i32
    %c0_i32_0 = arith.constant 0 : i32
    return %arg0, %c0_i32, %arg1 : i32, i32, i32
  }
}

module attributes {stable_mosaic.version = 11 : i64} {
  func.func @_affine_relu_kernel(%arg0: i32, %arg1: i32, %arg2: memref<1x64x32xf32, #tpu.memory_space<vmem>>, %arg3: memref<64x1xf32, #tpu.memory_space<vmem>>, %arg4: memref<64x1xf32, #tpu.memory_space<vmem>>, %arg5: memref<1x64x32xf32, #tpu.memory_space<vmem>>) attributes {dimension_semantics = [#tpu.dimension_semantics<parallel>, #tpu.dimension_semantics<parallel>], iteration_bounds = array<i64: 1, 1>, scalar_prefetch = 0 : i64, scratch_operands = 0 : i64, tpu.core_type = #tpu.core_type<tc>, window_params = [{transform_indices = @transform_0, window_bounds = array<i64: 1, 64, 32>}, {pipeline_mode = #tpu.pipeline_mode<synchronous>, transform_indices = @transform_1, window_bounds = array<i64: 64, 1>}, {pipeline_mode = #tpu.pipeline_mode<synchronous>, transform_indices = @transform_2, window_bounds = array<i64: 64, 1>}, {transform_indices = @transform_3, window_bounds = array<i64: 1, 64, 32>}]} {
    %c0 = arith.constant 0 : index
    %c0_0 = arith.constant 0 : index
    %c0_1 = arith.constant 0 : index
    %0 = vector.load %arg2[%c0, %c0_0, %c0_1] : memref<1x64x32xf32, #tpu.memory_space<vmem>>, vector<1x64x32xf32>
    %1 = vector.shape_cast %0 : vector<1x64x32xf32> to vector<64x32xf32>
    %c0_2 = arith.constant 0 : index
    %c0_3 = arith.constant 0 : index
    %2 = vector.load %arg3[%c0_2, %c0_3] : memref<64x1xf32, #tpu.memory_space<vmem>>, vector<64x1xf32>
    %3 = vector.broadcast %2 : vector<64x1xf32> to vector<64x32xf32>
    %4 = arith.mulf %1, %3 : vector<64x32xf32>
    %c0_4 = arith.constant 0 : index
    %c0_5 = arith.constant 0 : index
    %5 = vector.load %arg4[%c0_4, %c0_5] : memref<64x1xf32, #tpu.memory_space<vmem>>, vector<64x1xf32>
    %6 = vector.broadcast %5 : vector<64x1xf32> to vector<64x32xf32>
    %7 = arith.addf %4, %6 : vector<64x32xf32>
    %cst = arith.constant 0.000000e+00 : f32
    %8 = vector.broadcast %cst : f32 to vector<64x32xf32>
    %9 = arith.maximumf %7, %8 : vector<64x32xf32>
    %c0_6 = arith.constant 0 : index
    %c0_7 = arith.constant 0 : index
    %c0_8 = arith.constant 0 : index
    %10 = vector.load %arg5[%c0_6, %c0_7, %c0_8] : memref<1x64x32xf32, #tpu.memory_space<vmem>>, vector<1x64x32xf32>
    %11 = vector.shape_cast %10 : vector<1x64x32xf32> to vector<64x32xf32>
    %12 = vector.shape_cast %9 : vector<64x32xf32> to vector<1x64x32xf32>
    tpu.vector_store %arg5[%c0_6, %c0_7, %c0_8], %12 {strides = array<i32>} : memref<1x64x32xf32, #tpu.memory_space<vmem>>, vector<1x64x32xf32>,
    return
  }
  func.func @transform_0(%arg0: i32, %arg1: i32) -> (i32, i32, i32) {
    %c0_i32 = arith.constant 0 : i32
    %c0_i32_0 = arith.constant 0 : i32
    return %arg0, %c0_i32, %arg1 : i32, i32, i32
  }
  func.func @transform_1(%arg0: i32, %arg1: i32) -> (i32, i32) {
    %c0_i32 = arith.constant 0 : i32
    %c0_i32_0 = arith.constant 0 : i32
    %c0_i32_1 = arith.constant 0 : i32
    return %c0_i32, %c0_i32_0 : i32, i32
  }
  func.func @transform_2(%arg0: i32, %arg1: i32) -> (i32, i32) {
    %c0_i32 = arith.constant 0 : i32
    %c0_i32_0 = arith.constant 0 : i32
    %c0_i32_1 = arith.constant 0 : i32
    return %c0_i32, %c0_i32_0 : i32, i32
  }
  func.func @transform_3(%arg0: i32, %arg1: i32) -> (i32, i32, i32) {
    %c0_i32 = arith.constant 0 : i32
    %c0_i32_0 = arith.constant 0 : i32
    return %arg0, %c0_i32, %arg1 : i32, i32, i32
  }
}

module attributes {stable_mosaic.version = 11 : i64} {
  func.func @_gemm_stats_kernel(%arg0: i32, %arg1: i32, %arg2: memref<1x32x256xbf16, #tpu.memory_space<vmem>>, %arg3: memref<1x256x32xbf16, #tpu.memory_space<vmem>>, %arg4: memref<1x32x32xf32, #tpu.memory_space<vmem>>, %arg5: memref<1x32x128xf32, #tpu.memory_space<vmem>>, %arg6: memref<1x32x128xf32, #tpu.memory_space<vmem>>) attributes {dimension_semantics = [#tpu.dimension_semantics<parallel>, #tpu.dimension_semantics<parallel>], iteration_bounds = array<i64: 4, 1>, scalar_prefetch = 0 : i64, scratch_operands = 0 : i64, tpu.core_type = #tpu.core_type<tc>, window_params = [{transform_indices = @transform_0, window_bounds = array<i64: 1, 32, 256>}, {transform_indices = @transform_1, window_bounds = array<i64: 1, 256, 32>}, {transform_indices = @transform_2, window_bounds = array<i64: 1, 32, 32>}, {transform_indices = @transform_3, window_bounds = array<i64: 1, 32, 128>}, {transform_indices = @transform_4, window_bounds = array<i64: 1, 32, 128>}]} {
    %c0 = arith.constant 0 : index
    %c0_0 = arith.constant 0 : index
    %c0_1 = arith.constant 0 : index
    %0 = vector.load %arg2[%c0, %c0_0, %c0_1] : memref<1x32x256xbf16, #tpu.memory_space<vmem>>, vector<1x32x256xbf16>
    %1 = vector.shape_cast %0 : vector<1x32x256xbf16> to vector<32x256xbf16>
    %c0_2 = arith.constant 0 : index
    %c0_3 = arith.constant 0 : index
    %c0_4 = arith.constant 0 : index
    %2 = vector.load %arg3[%c0_2, %c0_3, %c0_4] : memref<1x256x32xbf16, #tpu.memory_space<vmem>>, vector<1x256x32xbf16>
    %3 = vector.shape_cast %2 : vector<1x256x32xbf16> to vector<256x32xbf16>
    %cst = arith.constant dense<0.000000e+00> : vector<32x32xf32>
    %4 = tpu.matmul %1, %3, %cst {dimension_numbers = #tpu.dot_dimension_numbers<[1], [0], [0], [1], [0, 0, 1, 1], [], []>} : vector<32x256xbf16>, vector<256x32xbf16>, vector<32x32xf32> -> vector<32x32xf32>
    %c0_5 = arith.constant 0 : index
    %c0_6 = arith.constant 0 : index
    %c0_7 = arith.constant 0 : index
    %5 = vector.load %arg4[%c0_5, %c0_6, %c0_7] : memref<1x32x32xf32, #tpu.memory_space<vmem>>, vector<1x32x32xf32>
    %6 = vector.shape_cast %5 : vector<1x32x32xf32> to vector<32x32xf32>
    %7 = vector.shape_cast %4 : vector<32x32xf32> to vector<1x32x32xf32>
    tpu.vector_store %arg4[%c0_5, %c0_6, %c0_7], %7 {strides = array<i32>} : memref<1x32x32xf32, #tpu.memory_space<vmem>>, vector<1x32x32xf32>,
    %cst_8 = arith.constant dense<0.000000e+00> : vector<32xf32>
    %8 = vector.multi_reduction <add>, %4, %cst_8 [1] : vector<32x32xf32> to vector<32xf32>
    %9 = vector.shape_cast %8 : vector<32xf32> to vector<32x1xf32>
    %10 = vector.shape_cast %9 : vector<32x1xf32> to vector<32x1xf32>
    %11 = vector.broadcast %10 : vector<32x1xf32> to vector<32x128xf32>
    %c0_9 = arith.constant 0 : index
    %c0_10 = arith.constant 0 : index
    %c0_11 = arith.constant 0 : index
    %12 = vector.load %arg5[%c0_9, %c0_10, %c0_11] : memref<1x32x128xf32, #tpu.memory_space<vmem>>, vector<1x32x128xf32>
    %13 = vector.shape_cast %12 : vector<1x32x128xf32> to vector<32x128xf32>
    %14 = vector.shape_cast %11 : vector<32x128xf32> to vector<1x32x128xf32>
    tpu.vector_store %arg5[%c0_9, %c0_10, %c0_11], %14 {strides = array<i32>} : memref<1x32x128xf32, #tpu.memory_space<vmem>>, vector<1x32x128xf32>,
    %15 = arith.mulf %4, %4 : vector<32x32xf32>
    %cst_12 = arith.constant dense<0.000000e+00> : vector<32xf32>
    %16 = vector.multi_reduction <add>, %15, %cst_12 [1] : vector<32x32xf32> to vector<32xf32>
    %17 = vector.shape_cast %16 : vector<32xf32> to vector<32x1xf32>
    %18 = vector.shape_cast %17 : vector<32x1xf32> to vector<32x1xf32>
    %19 = vector.broadcast %18 : vector<32x1xf32> to vector<32x128xf32>
    %c0_13 = arith.constant 0 : index
    %c0_14 = arith.constant 0 : index
    %c0_15 = arith.constant 0 : index
    %20 = vector.load %arg6[%c0_13, %c0_14, %c0_15] : memref<1x32x128xf32, #tpu.memory_space<vmem>>, vector<1x32x128xf32>
    %21 = vector.shape_cast %20 : vector<1x32x128xf32> to vector<32x128xf32>
    %22 = vector.shape_cast %19 : vector<32x128xf32> to vector<1x32x128xf32>
    tpu.vector_store %arg6[%c0_13, %c0_14, %c0_15], %22 {strides = array<i32>} : memref<1x32x128xf32, #tpu.memory_space<vmem>>, vector<1x32x128xf32>,
    return
  }
  func.func @transform_0(%arg0: i32, %arg1: i32) -> (i32, i32, i32) {
    %c0_i32 = arith.constant 0 : i32
    %c0_i32_0 = arith.constant 0 : i32
    %c0_i32_1 = arith.constant 0 : i32
    return %arg0, %c0_i32, %c0_i32_0 : i32, i32, i32
  }
  func.func @transform_1(%arg0: i32, %arg1: i32) -> (i32, i32, i32) {
    %c0_i32 = arith.constant 0 : i32
    %c0_i32_0 = arith.constant 0 : i32
    return %arg0, %c0_i32, %arg1 : i32, i32, i32
  }
  func.func @transform_2(%arg0: i32, %arg1: i32) -> (i32, i32, i32) {
    %c0_i32 = arith.constant 0 : i32
    %c0_i32_0 = arith.constant 0 : i32
    return %arg0, %c0_i32, %arg1 : i32, i32, i32
  }
  func.func @transform_3(%arg0: i32, %arg1: i32) -> (i32, i32, i32) {
    %c0_i32 = arith.constant 0 : i32
    %c0_i32_0 = arith.constant 0 : i32
    return %arg0, %c0_i32, %arg1 : i32, i32, i32
  }
  func.func @transform_4(%arg0: i32, %arg1: i32) -> (i32, i32, i32) {
    %c0_i32 = arith.constant 0 : i32
    %c0_i32_0 = arith.constant 0 : i32
    return %arg0, %c0_i32, %arg1 : i32, i32, i32
  }
}

module attributes {stable_mosaic.version = 11 : i64} {
  func.func @_affine_relu_kernel(%arg0: i32, %arg1: i32, %arg2: memref<1x32x32xf32, #tpu.memory_space<vmem>>, %arg3: memref<32x1xf32, #tpu.memory_space<vmem>>, %arg4: memref<32x1xf32, #tpu.memory_space<vmem>>, %arg5: memref<1x32x32xf32, #tpu.memory_space<vmem>>) attributes {dimension_semantics = [#tpu.dimension_semantics<parallel>, #tpu.dimension_semantics<parallel>], iteration_bounds = array<i64: 4, 1>, scalar_prefetch = 0 : i64, scratch_operands = 0 : i64, tpu.core_type = #tpu.core_type<tc>, window_params = [{transform_indices = @transform_0, window_bounds = array<i64: 1, 32, 32>}, {pipeline_mode = #tpu.pipeline_mode<synchronous>, transform_indices = @transform_1, window_bounds = array<i64: 32, 1>}, {pipeline_mode = #tpu.pipeline_mode<synchronous>, transform_indices = @transform_2, window_bounds = array<i64: 32, 1>}, {transform_indices = @transform_3, window_bounds = array<i64: 1, 32, 32>}]} {
    %c0 = arith.constant 0 : index
    %c0_0 = arith.constant 0 : index
    %c0_1 = arith.constant 0 : index
    %0 = vector.load %arg2[%c0, %c0_0, %c0_1] : memref<1x32x32xf32, #tpu.memory_space<vmem>>, vector<1x32x32xf32>
    %1 = vector.shape_cast %0 : vector<1x32x32xf32> to vector<32x32xf32>
    %c0_2 = arith.constant 0 : index
    %c0_3 = arith.constant 0 : index
    %2 = vector.load %arg3[%c0_2, %c0_3] : memref<32x1xf32, #tpu.memory_space<vmem>>, vector<32x1xf32>
    %3 = vector.broadcast %2 : vector<32x1xf32> to vector<32x32xf32>
    %4 = arith.mulf %1, %3 : vector<32x32xf32>
    %c0_4 = arith.constant 0 : index
    %c0_5 = arith.constant 0 : index
    %5 = vector.load %arg4[%c0_4, %c0_5] : memref<32x1xf32, #tpu.memory_space<vmem>>, vector<32x1xf32>
    %6 = vector.broadcast %5 : vector<32x1xf32> to vector<32x32xf32>
    %7 = arith.addf %4, %6 : vector<32x32xf32>
    %cst = arith.constant 0.000000e+00 : f32
    %8 = vector.broadcast %cst : f32 to vector<32x32xf32>
    %9 = arith.maximumf %7, %8 : vector<32x32xf32>
    %c0_6 = arith.constant 0 : index
    %c0_7 = arith.constant 0 : index
    %c0_8 = arith.constant 0 : index
    %10 = vector.load %arg5[%c0_6, %c0_7, %c0_8] : memref<1x32x32xf32, #tpu.memory_space<vmem>>, vector<1x32x32xf32>
    %11 = vector.shape_cast %10 : vector<1x32x32xf32> to vector<32x32xf32>
    %12 = vector.shape_cast %9 : vector<32x32xf32> to vector<1x32x32xf32>
    tpu.vector_store %arg5[%c0_6, %c0_7, %c0_8], %12 {strides = array<i32>} : memref<1x32x32xf32, #tpu.memory_space<vmem>>, vector<1x32x32xf32>,
    return
  }
  func.func @transform_0(%arg0: i32, %arg1: i32) -> (i32, i32, i32) {
    %c0_i32 = arith.constant 0 : i32
    %c0_i32_0 = arith.constant 0 : i32
    return %arg0, %c0_i32, %arg1 : i32, i32, i32
  }
  func.func @transform_1(%arg0: i32, %arg1: i32) -> (i32, i32) {
    %c0_i32 = arith.constant 0 : i32
    %c0_i32_0 = arith.constant 0 : i32
    %c0_i32_1 = arith.constant 0 : i32
    return %c0_i32, %c0_i32_0 : i32, i32
  }
  func.func @transform_2(%arg0: i32, %arg1: i32) -> (i32, i32) {
    %c0_i32 = arith.constant 0 : i32
    %c0_i32_0 = arith.constant 0 : i32
    %c0_i32_1 = arith.constant 0 : i32
    return %c0_i32, %c0_i32_0 : i32, i32
  }
  func.func @transform_3(%arg0: i32, %arg1: i32) -> (i32, i32, i32) {
    %c0_i32 = arith.constant 0 : i32
    %c0_i32_0 = arith.constant 0 : i32
    return %arg0, %c0_i32, %arg1 : i32, i32, i32
  }
}

module attributes {stable_mosaic.version = 11 : i64} {
  func.func @_gemm_stats_kernel(%arg0: i32, %arg1: i32, %arg2: memref<1x16x128xbf16, #tpu.memory_space<vmem>>, %arg3: memref<1x128x128xbf16, #tpu.memory_space<vmem>>, %arg4: memref<1x16x128xf32, #tpu.memory_space<vmem>>, %arg5: memref<1x16x128xf32, #tpu.memory_space<vmem>>, %arg6: memref<1x16x128xf32, #tpu.memory_space<vmem>>) attributes {dimension_semantics = [#tpu.dimension_semantics<parallel>, #tpu.dimension_semantics<parallel>], iteration_bounds = array<i64: 4, 1>, scalar_prefetch = 0 : i64, scratch_operands = 0 : i64, tpu.core_type = #tpu.core_type<tc>, window_params = [{transform_indices = @transform_0, window_bounds = array<i64: 1, 16, 128>}, {transform_indices = @transform_1, window_bounds = array<i64: 1, 128, 128>}, {transform_indices = @transform_2, window_bounds = array<i64: 1, 16, 128>}, {transform_indices = @transform_3, window_bounds = array<i64: 1, 16, 128>}, {transform_indices = @transform_4, window_bounds = array<i64: 1, 16, 128>}]} {
    %c0 = arith.constant 0 : index
    %c0_0 = arith.constant 0 : index
    %c0_1 = arith.constant 0 : index
    %0 = vector.load %arg2[%c0, %c0_0, %c0_1] : memref<1x16x128xbf16, #tpu.memory_space<vmem>>, vector<1x16x128xbf16>
    %1 = vector.shape_cast %0 : vector<1x16x128xbf16> to vector<16x128xbf16>
    %c0_2 = arith.constant 0 : index
    %c0_3 = arith.constant 0 : index
    %c0_4 = arith.constant 0 : index
    %2 = vector.load %arg3[%c0_2, %c0_3, %c0_4] : memref<1x128x128xbf16, #tpu.memory_space<vmem>>, vector<1x128x128xbf16>
    %3 = vector.shape_cast %2 : vector<1x128x128xbf16> to vector<128x128xbf16>
    %cst = arith.constant dense<0.000000e+00> : vector<16x128xf32>
    %4 = tpu.matmul %1, %3, %cst {dimension_numbers = #tpu.dot_dimension_numbers<[1], [0], [0], [1], [0, 0, 1, 1], [], []>} : vector<16x128xbf16>, vector<128x128xbf16>, vector<16x128xf32> -> vector<16x128xf32>
    %c0_5 = arith.constant 0 : index
    %c0_6 = arith.constant 0 : index
    %c0_7 = arith.constant 0 : index
    %5 = vector.load %arg4[%c0_5, %c0_6, %c0_7] : memref<1x16x128xf32, #tpu.memory_space<vmem>>, vector<1x16x128xf32>
    %6 = vector.shape_cast %5 : vector<1x16x128xf32> to vector<16x128xf32>
    %7 = vector.shape_cast %4 : vector<16x128xf32> to vector<1x16x128xf32>
    tpu.vector_store %arg4[%c0_5, %c0_6, %c0_7], %7 {strides = array<i32>} : memref<1x16x128xf32, #tpu.memory_space<vmem>>, vector<1x16x128xf32>,
    %cst_8 = arith.constant dense<0.000000e+00> : vector<16xf32>
    %8 = vector.multi_reduction <add>, %4, %cst_8 [1] : vector<16x128xf32> to vector<16xf32>
    %9 = vector.shape_cast %8 : vector<16xf32> to vector<16x1xf32>
    %10 = vector.shape_cast %9 : vector<16x1xf32> to vector<16x1xf32>
    %11 = vector.broadcast %10 : vector<16x1xf32> to vector<16x128xf32>
    %c0_9 = arith.constant 0 : index
    %c0_10 = arith.constant 0 : index
    %c0_11 = arith.constant 0 : index
    %12 = vector.load %arg5[%c0_9, %c0_10, %c0_11] : memref<1x16x128xf32, #tpu.memory_space<vmem>>, vector<1x16x128xf32>
    %13 = vector.shape_cast %12 : vector<1x16x128xf32> to vector<16x128xf32>
    %14 = vector.shape_cast %11 : vector<16x128xf32> to vector<1x16x128xf32>
    tpu.vector_store %arg5[%c0_9, %c0_10, %c0_11], %14 {strides = array<i32>} : memref<1x16x128xf32, #tpu.memory_space<vmem>>, vector<1x16x128xf32>,
    %15 = arith.mulf %4, %4 : vector<16x128xf32>
    %cst_12 = arith.constant dense<0.000000e+00> : vector<16xf32>
    %16 = vector.multi_reduction <add>, %15, %cst_12 [1] : vector<16x128xf32> to vector<16xf32>
    %17 = vector.shape_cast %16 : vector<16xf32> to vector<16x1xf32>
    %18 = vector.shape_cast %17 : vector<16x1xf32> to vector<16x1xf32>
    %19 = vector.broadcast %18 : vector<16x1xf32> to vector<16x128xf32>
    %c0_13 = arith.constant 0 : index
    %c0_14 = arith.constant 0 : index
    %c0_15 = arith.constant 0 : index
    %20 = vector.load %arg6[%c0_13, %c0_14, %c0_15] : memref<1x16x128xf32, #tpu.memory_space<vmem>>, vector<1x16x128xf32>
    %21 = vector.shape_cast %20 : vector<1x16x128xf32> to vector<16x128xf32>
    %22 = vector.shape_cast %19 : vector<16x128xf32> to vector<1x16x128xf32>
    tpu.vector_store %arg6[%c0_13, %c0_14, %c0_15], %22 {strides = array<i32>} : memref<1x16x128xf32, #tpu.memory_space<vmem>>, vector<1x16x128xf32>,
    return
  }
  func.func @transform_0(%arg0: i32, %arg1: i32) -> (i32, i32, i32) {
    %c0_i32 = arith.constant 0 : i32
    %c0_i32_0 = arith.constant 0 : i32
    %c0_i32_1 = arith.constant 0 : i32
    return %arg0, %c0_i32, %c0_i32_0 : i32, i32, i32
  }
  func.func @transform_1(%arg0: i32, %arg1: i32) -> (i32, i32, i32) {
    %c0_i32 = arith.constant 0 : i32
    %c0_i32_0 = arith.constant 0 : i32
    return %arg0, %c0_i32, %arg1 : i32, i32, i32
  }
  func.func @transform_2(%arg0: i32, %arg1: i32) -> (i32, i32, i32) {
    %c0_i32 = arith.constant 0 : i32
    %c0_i32_0 = arith.constant 0 : i32
    return %arg0, %c0_i32, %arg1 : i32, i32, i32
  }
  func.func @transform_3(%arg0: i32, %arg1: i32) -> (i32, i32, i32) {
    %c0_i32 = arith.constant 0 : i32
    %c0_i32_0 = arith.constant 0 : i32
    return %arg0, %c0_i32, %arg1 : i32, i32, i32
  }
  func.func @transform_4(%arg0: i32, %arg1: i32) -> (i32, i32, i32) {
    %c0_i32 = arith.constant 0 : i32
    %c0_i32_0 = arith.constant 0 : i32
    return %arg0, %c0_i32, %arg1 : i32, i32, i32
  }
}

module attributes {stable_mosaic.version = 11 : i64} {
  func.func @_affine_relu_kernel(%arg0: i32, %arg1: i32, %arg2: memref<1x16x128xf32, #tpu.memory_space<vmem>>, %arg3: memref<16x1xf32, #tpu.memory_space<vmem>>, %arg4: memref<16x1xf32, #tpu.memory_space<vmem>>, %arg5: memref<1x16x128xf32, #tpu.memory_space<vmem>>) attributes {dimension_semantics = [#tpu.dimension_semantics<parallel>, #tpu.dimension_semantics<parallel>], iteration_bounds = array<i64: 4, 1>, scalar_prefetch = 0 : i64, scratch_operands = 0 : i64, tpu.core_type = #tpu.core_type<tc>, window_params = [{transform_indices = @transform_0, window_bounds = array<i64: 1, 16, 128>}, {pipeline_mode = #tpu.pipeline_mode<synchronous>, transform_indices = @transform_1, window_bounds = array<i64: 16, 1>}, {pipeline_mode = #tpu.pipeline_mode<synchronous>, transform_indices = @transform_2, window_bounds = array<i64: 16, 1>}, {transform_indices = @transform_3, window_bounds = array<i64: 1, 16, 128>}]} {
    %c0 = arith.constant 0 : index
    %c0_0 = arith.constant 0 : index
    %c0_1 = arith.constant 0 : index
    %0 = vector.load %arg2[%c0, %c0_0, %c0_1] : memref<1x16x128xf32, #tpu.memory_space<vmem>>, vector<1x16x128xf32>
    %1 = vector.shape_cast %0 : vector<1x16x128xf32> to vector<16x128xf32>
    %c0_2 = arith.constant 0 : index
    %c0_3 = arith.constant 0 : index
    %2 = vector.load %arg3[%c0_2, %c0_3] : memref<16x1xf32, #tpu.memory_space<vmem>>, vector<16x1xf32>
    %3 = vector.broadcast %2 : vector<16x1xf32> to vector<16x128xf32>
    %4 = arith.mulf %1, %3 : vector<16x128xf32>
    %c0_4 = arith.constant 0 : index
    %c0_5 = arith.constant 0 : index
    %5 = vector.load %arg4[%c0_4, %c0_5] : memref<16x1xf32, #tpu.memory_space<vmem>>, vector<16x1xf32>
    %6 = vector.broadcast %5 : vector<16x1xf32> to vector<16x128xf32>
    %7 = arith.addf %4, %6 : vector<16x128xf32>
    %cst = arith.constant 0.000000e+00 : f32
    %8 = vector.broadcast %cst : f32 to vector<16x128xf32>
    %9 = arith.maximumf %7, %8 : vector<16x128xf32>
    %c0_6 = arith.constant 0 : index
    %c0_7 = arith.constant 0 : index
    %c0_8 = arith.constant 0 : index
    %10 = vector.load %arg5[%c0_6, %c0_7, %c0_8] : memref<1x16x128xf32, #tpu.memory_space<vmem>>, vector<1x16x128xf32>
    %11 = vector.shape_cast %10 : vector<1x16x128xf32> to vector<16x128xf32>
    %12 = vector.shape_cast %9 : vector<16x128xf32> to vector<1x16x128xf32>
    tpu.vector_store %arg5[%c0_6, %c0_7, %c0_8], %12 {strides = array<i32>} : memref<1x16x128xf32, #tpu.memory_space<vmem>>, vector<1x16x128xf32>,
    return
  }
  func.func @transform_0(%arg0: i32, %arg1: i32) -> (i32, i32, i32) {
    %c0_i32 = arith.constant 0 : i32
    %c0_i32_0 = arith.constant 0 : i32
    return %arg0, %c0_i32, %arg1 : i32, i32, i32
  }
  func.func @transform_1(%arg0: i32, %arg1: i32) -> (i32, i32) {
    %c0_i32 = arith.constant 0 : i32
    %c0_i32_0 = arith.constant 0 : i32
    %c0_i32_1 = arith.constant 0 : i32
    return %c0_i32, %c0_i32_0 : i32, i32
  }
  func.func @transform_2(%arg0: i32, %arg1: i32) -> (i32, i32) {
    %c0_i32 = arith.constant 0 : i32
    %c0_i32_0 = arith.constant 0 : i32
    %c0_i32_1 = arith.constant 0 : i32
    return %c0_i32, %c0_i32_0 : i32, i32
  }
  func.func @transform_3(%arg0: i32, %arg1: i32) -> (i32, i32, i32) {
    %c0_i32 = arith.constant 0 : i32
    %c0_i32_0 = arith.constant 0 : i32
    return %arg0, %c0_i32, %arg1 : i32, i32, i32
  }
}

module attributes {stable_mosaic.version = 11 : i64} {
  func.func @_gemm_stats_kernel(%arg0: i32, %arg1: i32, %arg2: memref<1x8x64xbf16, #tpu.memory_space<vmem>>, %arg3: memref<1x64x512xbf16, #tpu.memory_space<vmem>>, %arg4: memref<1x8x512xf32, #tpu.memory_space<vmem>>, %arg5: memref<1x8x128xf32, #tpu.memory_space<vmem>>, %arg6: memref<1x8x128xf32, #tpu.memory_space<vmem>>) attributes {dimension_semantics = [#tpu.dimension_semantics<parallel>, #tpu.dimension_semantics<parallel>], iteration_bounds = array<i64: 4, 1>, scalar_prefetch = 0 : i64, scratch_operands = 0 : i64, tpu.core_type = #tpu.core_type<tc>, window_params = [{transform_indices = @transform_0, window_bounds = array<i64: 1, 8, 64>}, {transform_indices = @transform_1, window_bounds = array<i64: 1, 64, 512>}, {transform_indices = @transform_2, window_bounds = array<i64: 1, 8, 512>}, {transform_indices = @transform_3, window_bounds = array<i64: 1, 8, 128>}, {transform_indices = @transform_4, window_bounds = array<i64: 1, 8, 128>}]} {
    %c0 = arith.constant 0 : index
    %c0_0 = arith.constant 0 : index
    %c0_1 = arith.constant 0 : index
    %0 = vector.load %arg2[%c0, %c0_0, %c0_1] : memref<1x8x64xbf16, #tpu.memory_space<vmem>>, vector<1x8x64xbf16>
    %1 = vector.shape_cast %0 : vector<1x8x64xbf16> to vector<8x64xbf16>
    %c0_2 = arith.constant 0 : index
    %c0_3 = arith.constant 0 : index
    %c0_4 = arith.constant 0 : index
    %2 = vector.load %arg3[%c0_2, %c0_3, %c0_4] : memref<1x64x512xbf16, #tpu.memory_space<vmem>>, vector<1x64x512xbf16>
    %3 = vector.shape_cast %2 : vector<1x64x512xbf16> to vector<64x512xbf16>
    %cst = arith.constant dense<0.000000e+00> : vector<8x512xf32>
    %4 = tpu.matmul %1, %3, %cst {dimension_numbers = #tpu.dot_dimension_numbers<[1], [0], [0], [1], [0, 0, 1, 1], [], []>} : vector<8x64xbf16>, vector<64x512xbf16>, vector<8x512xf32> -> vector<8x512xf32>
    %c0_5 = arith.constant 0 : index
    %c0_6 = arith.constant 0 : index
    %c0_7 = arith.constant 0 : index
    %5 = vector.load %arg4[%c0_5, %c0_6, %c0_7] : memref<1x8x512xf32, #tpu.memory_space<vmem>>, vector<1x8x512xf32>
    %6 = vector.shape_cast %5 : vector<1x8x512xf32> to vector<8x512xf32>
    %7 = vector.shape_cast %4 : vector<8x512xf32> to vector<1x8x512xf32>
    tpu.vector_store %arg4[%c0_5, %c0_6, %c0_7], %7 {strides = array<i32>} : memref<1x8x512xf32, #tpu.memory_space<vmem>>, vector<1x8x512xf32>,
    %cst_8 = arith.constant dense<0.000000e+00> : vector<8xf32>
    %8 = vector.multi_reduction <add>, %4, %cst_8 [1] : vector<8x512xf32> to vector<8xf32>
    %9 = vector.shape_cast %8 : vector<8xf32> to vector<8x1xf32>
    %10 = vector.shape_cast %9 : vector<8x1xf32> to vector<8x1xf32>
    %11 = vector.broadcast %10 : vector<8x1xf32> to vector<8x128xf32>
    %c0_9 = arith.constant 0 : index
    %c0_10 = arith.constant 0 : index
    %c0_11 = arith.constant 0 : index
    %12 = vector.load %arg5[%c0_9, %c0_10, %c0_11] : memref<1x8x128xf32, #tpu.memory_space<vmem>>, vector<1x8x128xf32>
    %13 = vector.shape_cast %12 : vector<1x8x128xf32> to vector<8x128xf32>
    %14 = vector.shape_cast %11 : vector<8x128xf32> to vector<1x8x128xf32>
    tpu.vector_store %arg5[%c0_9, %c0_10, %c0_11], %14 {strides = array<i32>} : memref<1x8x128xf32, #tpu.memory_space<vmem>>, vector<1x8x128xf32>,
    %15 = arith.mulf %4, %4 : vector<8x512xf32>
    %cst_12 = arith.constant dense<0.000000e+00> : vector<8xf32>
    %16 = vector.multi_reduction <add>, %15, %cst_12 [1] : vector<8x512xf32> to vector<8xf32>
    %17 = vector.shape_cast %16 : vector<8xf32> to vector<8x1xf32>
    %18 = vector.shape_cast %17 : vector<8x1xf32> to vector<8x1xf32>
    %19 = vector.broadcast %18 : vector<8x1xf32> to vector<8x128xf32>
    %c0_13 = arith.constant 0 : index
    %c0_14 = arith.constant 0 : index
    %c0_15 = arith.constant 0 : index
    %20 = vector.load %arg6[%c0_13, %c0_14, %c0_15] : memref<1x8x128xf32, #tpu.memory_space<vmem>>, vector<1x8x128xf32>
    %21 = vector.shape_cast %20 : vector<1x8x128xf32> to vector<8x128xf32>
    %22 = vector.shape_cast %19 : vector<8x128xf32> to vector<1x8x128xf32>
    tpu.vector_store %arg6[%c0_13, %c0_14, %c0_15], %22 {strides = array<i32>} : memref<1x8x128xf32, #tpu.memory_space<vmem>>, vector<1x8x128xf32>,
    return
  }
  func.func @transform_0(%arg0: i32, %arg1: i32) -> (i32, i32, i32) {
    %c0_i32 = arith.constant 0 : i32
    %c0_i32_0 = arith.constant 0 : i32
    %c0_i32_1 = arith.constant 0 : i32
    return %arg0, %c0_i32, %c0_i32_0 : i32, i32, i32
  }
  func.func @transform_1(%arg0: i32, %arg1: i32) -> (i32, i32, i32) {
    %c0_i32 = arith.constant 0 : i32
    %c0_i32_0 = arith.constant 0 : i32
    return %arg0, %c0_i32, %arg1 : i32, i32, i32
  }
  func.func @transform_2(%arg0: i32, %arg1: i32) -> (i32, i32, i32) {
    %c0_i32 = arith.constant 0 : i32
    %c0_i32_0 = arith.constant 0 : i32
    return %arg0, %c0_i32, %arg1 : i32, i32, i32
  }
  func.func @transform_3(%arg0: i32, %arg1: i32) -> (i32, i32, i32) {
    %c0_i32 = arith.constant 0 : i32
    %c0_i32_0 = arith.constant 0 : i32
    return %arg0, %c0_i32, %arg1 : i32, i32, i32
  }
  func.func @transform_4(%arg0: i32, %arg1: i32) -> (i32, i32, i32) {
    %c0_i32 = arith.constant 0 : i32
    %c0_i32_0 = arith.constant 0 : i32
    return %arg0, %c0_i32, %arg1 : i32, i32, i32
  }
}

module attributes {stable_mosaic.version = 11 : i64} {
  func.func @_affine_relu_kernel(%arg0: i32, %arg1: i32, %arg2: memref<1x8x512xf32, #tpu.memory_space<vmem>>, %arg3: memref<8x1xf32, #tpu.memory_space<vmem>>, %arg4: memref<8x1xf32, #tpu.memory_space<vmem>>, %arg5: memref<1x8x512xf32, #tpu.memory_space<vmem>>) attributes {dimension_semantics = [#tpu.dimension_semantics<parallel>, #tpu.dimension_semantics<parallel>], iteration_bounds = array<i64: 4, 1>, scalar_prefetch = 0 : i64, scratch_operands = 0 : i64, tpu.core_type = #tpu.core_type<tc>, window_params = [{transform_indices = @transform_0, window_bounds = array<i64: 1, 8, 512>}, {pipeline_mode = #tpu.pipeline_mode<synchronous>, transform_indices = @transform_1, window_bounds = array<i64: 8, 1>}, {pipeline_mode = #tpu.pipeline_mode<synchronous>, transform_indices = @transform_2, window_bounds = array<i64: 8, 1>}, {transform_indices = @transform_3, window_bounds = array<i64: 1, 8, 512>}]} {
    %c0 = arith.constant 0 : index
    %c0_0 = arith.constant 0 : index
    %c0_1 = arith.constant 0 : index
    %0 = vector.load %arg2[%c0, %c0_0, %c0_1] : memref<1x8x512xf32, #tpu.memory_space<vmem>>, vector<1x8x512xf32>
    %1 = vector.shape_cast %0 : vector<1x8x512xf32> to vector<8x512xf32>
    %c0_2 = arith.constant 0 : index
    %c0_3 = arith.constant 0 : index
    %2 = vector.load %arg3[%c0_2, %c0_3] : memref<8x1xf32, #tpu.memory_space<vmem>>, vector<8x1xf32>
    %3 = vector.broadcast %2 : vector<8x1xf32> to vector<8x512xf32>
    %4 = arith.mulf %1, %3 : vector<8x512xf32>
    %c0_4 = arith.constant 0 : index
    %c0_5 = arith.constant 0 : index
    %5 = vector.load %arg4[%c0_4, %c0_5] : memref<8x1xf32, #tpu.memory_space<vmem>>, vector<8x1xf32>
    %6 = vector.broadcast %5 : vector<8x1xf32> to vector<8x512xf32>
    %7 = arith.addf %4, %6 : vector<8x512xf32>
    %cst = arith.constant 0.000000e+00 : f32
    %8 = vector.broadcast %cst : f32 to vector<8x512xf32>
    %9 = arith.maximumf %7, %8 : vector<8x512xf32>
    %c0_6 = arith.constant 0 : index
    %c0_7 = arith.constant 0 : index
    %c0_8 = arith.constant 0 : index
    %10 = vector.load %arg5[%c0_6, %c0_7, %c0_8] : memref<1x8x512xf32, #tpu.memory_space<vmem>>, vector<1x8x512xf32>
    %11 = vector.shape_cast %10 : vector<1x8x512xf32> to vector<8x512xf32>
    %12 = vector.shape_cast %9 : vector<8x512xf32> to vector<1x8x512xf32>
    tpu.vector_store %arg5[%c0_6, %c0_7, %c0_8], %12 {strides = array<i32>} : memref<1x8x512xf32, #tpu.memory_space<vmem>>, vector<1x8x512xf32>,
    return
  }
  func.func @transform_0(%arg0: i32, %arg1: i32) -> (i32, i32, i32) {
    %c0_i32 = arith.constant 0 : i32
    %c0_i32_0 = arith.constant 0 : i32
    return %arg0, %c0_i32, %arg1 : i32, i32, i32
  }
  func.func @transform_1(%arg0: i32, %arg1: i32) -> (i32, i32) {
    %c0_i32 = arith.constant 0 : i32
    %c0_i32_0 = arith.constant 0 : i32
    %c0_i32_1 = arith.constant 0 : i32
    return %c0_i32, %c0_i32_0 : i32, i32
  }
  func.func @transform_2(%arg0: i32, %arg1: i32) -> (i32, i32) {
    %c0_i32 = arith.constant 0 : i32
    %c0_i32_0 = arith.constant 0 : i32
    %c0_i32_1 = arith.constant 0 : i32
    return %c0_i32, %c0_i32_0 : i32, i32
  }
  func.func @transform_3(%arg0: i32, %arg1: i32) -> (i32, i32, i32) {
    %c0_i32 = arith.constant 0 : i32
    %c0_i32_0 = arith.constant 0 : i32
    return %arg0, %c0_i32, %arg1 : i32, i32, i32
  }
}

module attributes {stable_mosaic.version = 11 : i64} {
  func.func @_gemm_bias_tanh_kernel(%arg0: i32, %arg1: i32, %arg2: memref<1x3x32xbf16, #tpu.memory_space<vmem>>, %arg3: memref<1x32x2048xbf16, #tpu.memory_space<vmem>>, %arg4: memref<3x1xf32, #tpu.memory_space<vmem>>, %arg5: memref<1x3x2048xf32, #tpu.memory_space<vmem>>) attributes {dimension_semantics = [#tpu.dimension_semantics<parallel>, #tpu.dimension_semantics<parallel>], iteration_bounds = array<i64: 4, 1>, scalar_prefetch = 0 : i64, scratch_operands = 0 : i64, tpu.core_type = #tpu.core_type<tc>, window_params = [{transform_indices = @transform_0, window_bounds = array<i64: 1, 3, 32>}, {transform_indices = @transform_1, window_bounds = array<i64: 1, 32, 2048>}, {pipeline_mode = #tpu.pipeline_mode<synchronous>, transform_indices = @transform_2, window_bounds = array<i64: 3, 1>}, {transform_indices = @transform_3, window_bounds = array<i64: 1, 3, 2048>}]} {
    %c0 = arith.constant 0 : index
    %c0_0 = arith.constant 0 : index
    %c0_1 = arith.constant 0 : index
    %0 = vector.load %arg2[%c0, %c0_0, %c0_1] : memref<1x3x32xbf16, #tpu.memory_space<vmem>>, vector<1x3x32xbf16>
    %1 = vector.shape_cast %0 : vector<1x3x32xbf16> to vector<3x32xbf16>
    %c0_2 = arith.constant 0 : index
    %c0_3 = arith.constant 0 : index
    %c0_4 = arith.constant 0 : index
    %2 = vector.load %arg3[%c0_2, %c0_3, %c0_4] : memref<1x32x2048xbf16, #tpu.memory_space<vmem>>, vector<1x32x2048xbf16>
    %3 = vector.shape_cast %2 : vector<1x32x2048xbf16> to vector<32x2048xbf16>
    %cst = arith.constant dense<0.000000e+00> : vector<3x2048xf32>
    %4 = tpu.matmul %1, %3, %cst {dimension_numbers = #tpu.dot_dimension_numbers<[1], [0], [0], [1], [0, 0, 1, 1], [], []>} : vector<3x32xbf16>, vector<32x2048xbf16>, vector<3x2048xf32> -> vector<3x2048xf32>
    %c0_5 = arith.constant 0 : index
    %c0_6 = arith.constant 0 : index
    %5 = vector.load %arg4[%c0_5, %c0_6] : memref<3x1xf32, #tpu.memory_space<vmem>>, vector<3x1xf32>
    %6 = vector.broadcast %5 : vector<3x1xf32> to vector<3x2048xf32>
    %7 = arith.addf %4, %6 : vector<3x2048xf32>
    %8 = math.tanh %7 : vector<3x2048xf32>
    %c0_7 = arith.constant 0 : index
    %c0_8 = arith.constant 0 : index
    %c0_9 = arith.constant 0 : index
    %9 = vector.load %arg5[%c0_7, %c0_8, %c0_9] : memref<1x3x2048xf32, #tpu.memory_space<vmem>>, vector<1x3x2048xf32>
    %10 = vector.shape_cast %9 : vector<1x3x2048xf32> to vector<3x2048xf32>
    %11 = vector.shape_cast %8 : vector<3x2048xf32> to vector<1x3x2048xf32>
    tpu.vector_store %arg5[%c0_7, %c0_8, %c0_9], %11 {strides = array<i32>} : memref<1x3x2048xf32, #tpu.memory_space<vmem>>, vector<1x3x2048xf32>,
    return
  }
  func.func @transform_0(%arg0: i32, %arg1: i32) -> (i32, i32, i32) {
    %c0_i32 = arith.constant 0 : i32
    %c0_i32_0 = arith.constant 0 : i32
    %c0_i32_1 = arith.constant 0 : i32
    return %arg0, %c0_i32, %c0_i32_0 : i32, i32, i32
  }
  func.func @transform_1(%arg0: i32, %arg1: i32) -> (i32, i32, i32) {
    %c0_i32 = arith.constant 0 : i32
    %c0_i32_0 = arith.constant 0 : i32
    return %arg0, %c0_i32, %arg1 : i32, i32, i32
  }
  func.func @transform_2(%arg0: i32, %arg1: i32) -> (i32, i32) {
    %c0_i32 = arith.constant 0 : i32
    %c0_i32_0 = arith.constant 0 : i32
    %c0_i32_1 = arith.constant 0 : i32
    return %c0_i32, %c0_i32_0 : i32, i32
  }
  func.func @transform_3(%arg0: i32, %arg1: i32) -> (i32, i32, i32) {
    %c0_i32 = arith.constant 0 : i32
    %c0_i32_0 = arith.constant 0 : i32
    return %arg0, %c0_i32, %arg1 : i32, i32, i32
  }
}

</mosaic_0001>

<bundles_post_ra>
// kernel: generator_forward.10
= control target key start
LH: loop header
LB: loop body
LE: loop exit
PB: predicated region body
PF: predicated region fallthrough
CT: control target
= control target key end

     0   :  { %v158_v0 = vmov 0   ;;  %vm142_vm0 = vcmask 261120   ;;  %s283_s1 = inlined_call_operand.vmem [shape: f32[64,1], index: 1, kind: input, shape index: {}]   ;;  %s284_s2 = inlined_call_operand.vmem [shape: f32[64,1], index: 2, kind: input, shape index: {}]   ;;  %s285_s0 = inlined_call_operand.vmem [shape: f32[1,64,32], index: 0, kind: input, shape index: {}]   ;;  %s286_s3 = inlined_call_operand.vmem [shape: f32[1,64,32], index: 3, kind: output, shape index: {}]  }
   0x1   :  { %157 = vset.pattern.permute.xlu1 %v158_v0  ;;  %156 = vset.pattern.permute.xlu0 %v158_v0  ;;  %v24_v1 = vld [vmem:[%s283_s1 + $0x10] sm:$0xff]  ;;  %v22_v2 = vld [vmem:[%s283_s1] sm:$0xff]  ;;  %v25_v3 = vld [vmem:[%s283_s1 + $0x18] sm:$0xff] }
   0x2   :  { %42 = vperm.xlu1 %157, %v24_v1   ;;  %32 = vperm.xlu0 %156, %v22_v2   ;;  %v23_v4 = vld [vmem:[%s283_s1 + $0x8] sm:$0xff]  ;;  %v26_v6 = vld [vmem:[%s283_s1 + $0x20] sm:$0xff]  ;;  %v29_v7 = vld [vmem:[%s283_s1 + $0x38] sm:$0xff] }
   0x3   :  { %v27_v5 = vld [vmem:[%s283_s1 + $0x28] sm:$0xff]  ;;  %v28_v8 = vld [vmem:[%s283_s1 + $0x30] sm:$0xff]  ;;  %v78_v10 = vld [vmem:[%s284_s2] sm:$0xff] }
   0x4   :  { %v79_v9 = vld [vmem:[%s284_s2 + $0x8] sm:$0xff]  ;;  %v81_v11 = vld [vmem:[%s284_s2 + $0x18] sm:$0xff]  ;;  %v80_v12 = vld [vmem:[%s284_s2 + $0x10] sm:$0xff] }
   0x5   :  { %v83_v13 = vld [vmem:[%s284_s2 + $0x28] sm:$0xff]  ;;  %v82_v14 = vld [vmem:[%s284_s2 + $0x20] sm:$0xff]  ;;  %v85_v15 = vld [vmem:[%s284_s2 + $0x38] sm:$0xff] }
   0x6   :  { %47 = vperm.xlu1 %157, %v25_v3   ;;  %37 = vperm.xlu0 %156, %v23_v4   ;;  %v84_v16 = vld [vmem:[%s284_s2 + $0x30] sm:$0xff]  ;;  %v14_v23 = vld [vmem:[%s285_s0] sm:$0xff]  ;;  %v15_v24 = vld [vmem:[%s285_s0 + $0x8] sm:$0xff] }
   0x7   :  { %v16_v29 = vld [vmem:[%s285_s0 + $0x10] sm:$0xff]  ;;  %v17_v30 = vld [vmem:[%s285_s0 + $0x18] sm:$0xff]  ;;  %v19_v39 = vld [vmem:[%s285_s0 + $0x28] sm:$0xff] }
   0x8   :  { %v18_v40 = vld [vmem:[%s285_s0 + $0x20] sm:$0xff]  ;;  %v21_v49 = vld [vmem:[%s285_s0 + $0x38] sm:$0xff]  ;;  %v20_v50 = vld [vmem:[%s285_s0 + $0x30] sm:$0xff] }
   0xa   :  { %57 = vperm.xlu1 %157, %v27_v5   ;;  %52 = vperm.xlu0 %156, %v26_v6  }
   0xe   :  { %67 = vperm.xlu1 %157, %v29_v7   ;;  %62 = vperm.xlu0 %156, %v28_v8  }
  0x12   :  { %93 = vperm.xlu1 %157, %v79_v9   ;;  %88 = vperm.xlu0 %156, %v78_v10  }
  0x16   :  { %103 = vperm.xlu1 %157, %v81_v11   ;;  %98 = vperm.xlu0 %156, %v80_v12  }
  0x1a   :  { %113 = vperm.xlu1 %157, %v83_v13   ;;  %108 = vperm.xlu0 %156, %v82_v14  }
  0x1e   :  { %123 = vperm.xlu1 %157, %v85_v15   ;;  %118 = vperm.xlu0 %156, %v84_v16  }
  0x7d   :  { %v43_v17 = vpop.permute.xlu1 %42  ;;  %v33_v18 = vpop.permute.xlu0 %32 }
  0x7e   :  { %v70_v27 = vmul.f32 %v33_v18, %v14_v23  ;;  %v72_v35 = vmul.f32 %v43_v17, %v16_v29 }
  0x81   :  { %v48_v19 = vpop.permute.xlu1 %47  ;;  %v38_v20 = vpop.permute.xlu0 %37 }
  0x82   :  { %v71_v28 = vmul.f32 %v38_v20, %v15_v24  ;;  %v73_v36 = vmul.f32 %v48_v19, %v17_v30 }
  0x85   :  { %v58_v21 = vpop.permute.xlu1 %57  ;;  %v53_v22 = vpop.permute.xlu0 %52 }
  0x86   :  { %v75_v45 = vmul.f32 %v58_v21, %v19_v39  ;;  %v74_v46 = vmul.f32 %v53_v22, %v18_v40 }
  0x89   :  { %v68_v25 = vpop.permute.xlu1 %67  ;;  %v63_v26 = vpop.permute.xlu0 %62 }
  0x8a   :  { %v77_v55 = vmul.f32 %v68_v25, %v21_v49  ;;  %v76_v56 = vmul.f32 %v63_v26, %v20_v50 }
  0x8d   :  { %v94_v31 = vpop.permute.xlu1 %93  ;;  %v89_v32 = vpop.permute.xlu0 %88 }
  0x8e   :  { %v127_v33 = vadd.f32 %v94_v31, %v71_v28  ;;  %v126_v34 = vadd.f32 %v89_v32, %v70_v27 }
  0x90   :  { %v135_v37 = vmax.f32 %v127_v33, 0.0  ;;  %v134_v38 = vmax.f32 %v126_v34, 0.0 }
  0x91   :  { %v104_v41 = vpop.permute.xlu1 %103  ;;  %v99_v42 = vpop.permute.xlu0 %98 }
  0x92   :  { %144 = vst.msk [vmem:[%s286_s3 + $0x8] sm:$0xff] %vm142_vm0, %v135_v37  ;;  %143 = vst.msk [vmem:[%s286_s3] sm:$0xff] %vm142_vm0, %v134_v38  ;;  %v129_v43 = vadd.f32 %v104_v41, %v73_v36  ;;  %v128_v44 = vadd.f32 %v99_v42, %v72_v35 }
  0x94   :  { %v137_v47 = vmax.f32 %v129_v43, 0.0  ;;  %v136_v48 = vmax.f32 %v128_v44, 0.0 }
  0x95   :  { %v114_v51 = vpop.permute.xlu1 %113  ;;  %v109_v52 = vpop.permute.xlu0 %108 }
  0x96   :  { %146 = vst.msk [vmem:[%s286_s3 + $0x18] sm:$0xff] %vm142_vm0, %v137_v47  ;;  %145 = vst.msk [vmem:[%s286_s3 + $0x10] sm:$0xff] %vm142_vm0, %v136_v48  ;;  %v131_v53 = vadd.f32 %v114_v51, %v75_v45  ;;  %v130_v54 = vadd.f32 %v109_v52, %v74_v46 }
  0x98   :  { %v139_v57 = vmax.f32 %v131_v53, 0.0  ;;  %v138_v58 = vmax.f32 %v130_v54, 0.0 }
  0x99   :  { %v124_v59 = vpop.permute.xlu1 %123  ;;  %v119_v60 = vpop.permute.xlu0 %118 }
  0x9a   :  { %148 = vst.msk [vmem:[%s286_s3 + $0x28] sm:$0xff] %vm142_vm0, %v139_v57  ;;  %147 = vst.msk [vmem:[%s286_s3 + $0x20] sm:$0xff] %vm142_vm0, %v138_v58  ;;  %v133_v61 = vadd.f32 %v124_v59, %v77_v55  ;;  %v132_v62 = vadd.f32 %v119_v60, %v76_v56 }
  0x9c   :  { %v141_v63 = vmax.f32 %v133_v61, 0.0  ;;  %v140_v0 = vmax.f32 %v132_v62, 0.0 }
  0x9e   :  { %150 = vst.msk [vmem:[%s286_s3 + $0x38] sm:$0xff] %vm142_vm0, %v141_v63  ;;  %149 = vst.msk [vmem:[%s286_s3 + $0x30] sm:$0xff] %vm142_vm0, %v140_v0 }

// kernel: generator_forward.9
= control target key start
LH: loop header
LB: loop body
LE: loop exit
PB: predicated region body
PF: predicated region fallthrough
CT: control target
= control target key end

     0   :  { %10 = vsyncpa [#allocation3], 0  ;;  %s497_s15 = smov [#allocation2]   ;;  %s672_s0 = inlined_call_operand.hbm [shape: bf16[1,64,256], index: 0, kind: input, shape index: {}]   ;;  %s673_s1 = inlined_call_operand.vmem [shape: bf16[1,256,32], index: 1, kind: input, shape index: {}]   ;;  %s674_s2 = inlined_call_operand.vmem [shape: f32[1,64,32], index: 2, kind: output, shape index: {0}]   ;;  %s675_s3 = inlined_call_operand.vmem [shape: f32[1,64,128], index: 3, kind: output, shape index: {1}]   ;;  %s676_s4 = inlined_call_operand.vmem [shape: f32[1,64,128], index: 4, kind: output, shape index: {2}]  }
   0x1   :  { %s16_s16 = sshll.u32 %s497_s15, 4  ;;  %s17_s16 = int_to_ptr.vmem [resolvable:$true] %s16_s16 }
   0x2   :  { %s483_s17 = scalar_lea.vmem %s17_s16, 1024  ;;  %p488_p1 = scmp.lt.s32.totalorder %s17_s16, %s17_s16 }
   0x3   :  { %p484_p0 = scmp.ne.s32.totalorder %s17_s16, %s483_s17  ;;  %p489_p2 = scmp.lt.s32.totalorder %s483_s17, %s483_s17 }
   0x5   :  { %p490_p3 = por %p489_p2, %p488_p1 }
   0x7   :  { %p491_p4 = pnand %p490_p3, %p484_p0 }
   0x9   :  { %494 = shalt.err (!%p491_p4)
}
   0xa   :  { %s498_s18 = smov 128   ;;  %s499_s19 = smov 8  }
   0xb   :  { %22 = dma.hbm_to_vmem [thread:$0]  %s672_s0, 1024, %s17_s16, [#allocation3], %s498_s18, %s498_s18, %s499_s19  }
   0xc   :  { %495 = dma.done.wait [#allocation3], 1024  }
   0xd   :  { %496 = vsyncadd [#allocation3], 4294966272  ;;  %v447_v0 = vld [vmem:[%s673_s1 + $0x78] sm:$0xff]   ;;  %v449_v2 = vld [vmem:[%s673_s1 + $0x70] sm:$0xff]   ;;  %vm270_vm0 = vcmask 261120  }
   0xe   :  { %v448_v1 = vld [vmem:[%s673_s1 + $0x38] sm:$0xff]   ;;  %388 = vmatprep.subr.bf16.mxu0 %v447_v0  ;;  %428 = vmatprep.subr.bf16.mxu1 %v447_v0  ;;  %v450_v3 = vld [vmem:[%s673_s1 + $0x30] sm:$0xff]   ;;  %v451_v4 = vld [vmem:[%s673_s1 + $0x68] sm:$0xff]  }
   0xf   :  { %389 = vmatpush3.bf16.msra.mxu0 %v448_v1  ;;  %436 = vmatpush3.bf16.msra.mxu1 %v448_v1  ;;  %v452_v5 = vld [vmem:[%s673_s1 + $0x28] sm:$0xff]   ;;  %v453_v6 = vld [vmem:[%s673_s1 + $0x60] sm:$0xff]   ;;  %v455_v8 = vld [vmem:[%s673_s1 + $0x58] sm:$0xff]  }
  0x10   :  { %390 = vmatprep.subr.bf16.mxu0 %v449_v2  ;;  %429 = vmatprep.subr.bf16.mxu1 %v449_v2  ;;  %v454_v7 = vld [vmem:[%s673_s1 + $0x20] sm:$0xff]   ;;  %v456_v9 = vld [vmem:[%s673_s1 + $0x18] sm:$0xff]   ;;  %v457_v10 = vld [vmem:[%s673_s1 + $0x50] sm:$0xff]  }
  0x11   :  { %v465_v11 = vld [vmem:[#allocation2 + $0x4] ss:$8 sps:$4 sm:$0xff]   ;;  %v458_v13 = vld [vmem:[%s673_s1 + $0x10] sm:$0xff]   ;;  %v463_v18 = vld [vmem:[#allocation2] ss:$8 sps:$4 sm:$0xff]  }
  0x12   :  { %v468_v12 = vld [vmem:[#allocation2 + $0x24] ss:$8 sps:$4 sm:$0xff]   ;;  %237 = vmatprep.mubr.bf16.mxu0 %v465_v11  ;;  %v466_v19 = vld [vmem:[#allocation2 + $0x20] ss:$8 sps:$4 sm:$0xff]   ;;  %v469_v20 = vld [vmem:[#allocation2 + $0x14] ss:$8 sps:$4 sm:$0xff]  }
  0x13   :  { %391 = vmatpush3.bf16.msra.mxu0 %v450_v3  ;;  %437 = vmatpush3.bf16.msra.mxu1 %v450_v3  ;;  %v459_v14 = vld [vmem:[%s673_s1 + $0x48] sm:$0xff]   ;;  %v461_v16 = vld [vmem:[%s673_s1 + $0x40] sm:$0xff]   ;;  %v472_v21 = vld [vmem:[#allocation2 + $0x34] ss:$8 sps:$4 sm:$0xff]  }
  0x14   :  { %392 = vmatprep.subr.bf16.mxu0 %v451_v4  ;;  %430 = vmatprep.subr.bf16.mxu1 %v451_v4  ;;  %v460_v15 = vld [vmem:[%s673_s1 + $0x8] sm:$0xff]   ;;  %v462_v17 = vld [vmem:[%s673_s1] sm:$0xff]   ;;  %v471_v22 = vld [vmem:[#allocation2 + $0x10] ss:$8 sps:$4 sm:$0xff]  }
  0x15   :  { %253 = vmatprep.mubr.bf16.mxu1 %v468_v12  ;;  %v474_v23 = vld [vmem:[#allocation2 + $0x30] ss:$8 sps:$4 sm:$0xff]  }
  0x17   :  { %393 = vmatpush3.bf16.msra.mxu0 %v452_v5  ;;  %438 = vmatpush3.bf16.msra.mxu1 %v452_v5 }
  0x18   :  { %394 = vmatprep.subr.bf16.mxu0 %v453_v6  ;;  %431 = vmatprep.subr.bf16.mxu1 %v453_v6 }
  0x1b   :  { %395 = vmatpush3.bf16.msra.mxu0 %v454_v7  ;;  %439 = vmatpush3.bf16.msra.mxu1 %v454_v7 }
  0x1c   :  { %396 = vmatprep.subr.bf16.mxu0 %v455_v8  ;;  %432 = vmatprep.subr.bf16.mxu1 %v455_v8 }
  0x1f   :  { %397 = vmatpush3.bf16.msra.mxu0 %v456_v9  ;;  %440 = vmatpush3.bf16.msra.mxu1 %v456_v9 }
  0x20   :  { %398 = vmatprep.subr.bf16.mxu0 %v457_v10  ;;  %433 = vmatprep.subr.bf16.mxu1 %v457_v10 }
  0x23   :  { %399 = vmatpush3.bf16.msra.mxu0 %v458_v13  ;;  %441 = vmatpush3.bf16.msra.mxu1 %v458_v13 }
  0x24   :  { %400 = vmatprep.subr.bf16.mxu0 %v459_v14  ;;  %434 = vmatprep.subr.bf16.mxu1 %v459_v14 }
  0x27   :  { %401 = vmatpush3.bf16.msra.mxu0 %v460_v15  ;;  %442 = vmatpush3.bf16.msra.mxu1 %v460_v15 }
  0x28   :  { %402 = vmatprep.subr.bf16.mxu0 %v461_v16  ;;  %435 = vmatprep.subr.bf16.mxu1 %v461_v16 }
  0x2b   :  { %403 = vmatpush3.bf16.msra.mxu0 %v462_v17  ;;  %443 = vmatpush3.bf16.msra.mxu1 %v462_v17 }
  0x2e   :  { %238 = vmatmul.mubr.bf16.vlgmr.msra.gmra.mxu0 %v463_v18  ;;  %254 = vmatmul.mubr.bf16.vlgmr.msra.gmra.mxu1 %v466_v19 }
  0x2f   :  { %245 = vmatprep.mubr.bf16.mxu0 %v469_v20  ;;  %261 = vmatprep.mubr.bf16.mxu1 %v472_v21 }
  0x36   :  { %246 = vmatmul.mubr.bf16.gmra.mxu0 %v471_v22  ;;  %262 = vmatmul.mubr.bf16.gmra.mxu1 %v474_v23 }
  0xee   :  { %v404_v24 = vpop.f32.mrf.mxu0  ;;  %v416_v25 = vpop.f32.mrf.mxu1 }
  0xf0   :  { %v405_v26 = vpop.f32.mrf.mxu0  ;;  %v417_v27 = vpop.f32.mrf.mxu1 }
  0xf1   :  { %v406_v28 = vadd.f32 %v405_v26, %v404_v24  ;;  %v418_v29 = vadd.f32 %v417_v27, %v416_v25 }
  0xf2   :  { %v407_v30 = vpop.f32.mrf.mxu0  ;;  %v419_v31 = vpop.f32.mrf.mxu1 }
  0xf3   :  { %271 = vst.msk [vmem:[%s674_s2] sm:$0xff] %vm270_vm0, %v406_v28  ;;  %275 = vst.msk [vmem:[%s674_s2 + $0x20] sm:$0xff] %vm270_vm0, %v418_v29  ;;  %v279_v32 = vsel %vm270_vm0, %v406_v28, 0.0  ;;  %v291_v40 = vsel %vm270_vm0, %v418_v29, 0.0  ;;  %v311_v42 = vmul.f32 %v406_v28, %v406_v28  ;;  %v315_v52 = vmul.f32 %v418_v29, %v418_v29 }
  0xf4   :  { %v408_v33 = vpop.f32.mrf.mxu0  ;;  %v420_v34 = vpop.f32.mrf.mxu1  ;;  %280 = vadd.xlane.f32.xlu0 %v279_v32 }
  0xf5   :  { %v409_v35 = vadd.f32 %v408_v33, %v407_v30  ;;  %v421_v36 = vadd.f32 %v420_v34, %v419_v31  ;;  %v319_v50 = vsel %vm270_vm0, %v311_v42, 0.0  ;;  %v331_v58 = vsel %vm270_vm0, %v315_v52, 0.0 }
  0xf6   :  { %v410_v37 = vpop.f32.mrf.mxu0  ;;  %v422_v38 = vpop.f32.mrf.mxu1 }
  0xf7   :  { %272 = vst.msk [vmem:[%s674_s2 + $0x8] sm:$0xff] %vm270_vm0, %v409_v35  ;;  %276 = vst.msk [vmem:[%s674_s2 + $0x28] sm:$0xff] %vm270_vm0, %v421_v36  ;;  %v294_v39 = vsel %vm270_vm0, %v421_v36, 0.0  ;;  %v312_v41 = vmul.f32 %v409_v35, %v409_v35  ;;  %v316_v51 = vmul.f32 %v421_v36, %v421_v36  ;;  %v282_v60 = vsel %vm270_vm0, %v409_v35, 0.0 }
  0xf8   :  { %295 = vadd.xlane.f32.xlu1 %v294_v39  ;;  %292 = vadd.xlane.f32.xlu0 %v291_v40  ;;  %v411_v43 = vpop.f32.mrf.mxu0  ;;  %v423_v44 = vpop.f32.mrf.mxu1 }
  0xf9   :  { %v412_v45 = vadd.f32 %v411_v43, %v410_v37  ;;  %v424_v46 = vadd.f32 %v423_v44, %v422_v38  ;;  %v322_v49 = vsel %vm270_vm0, %v312_v41, 0.0  ;;  %v334_v57 = vsel %vm270_vm0, %v316_v51, 0.0 }
  0xfa   :  { %v413_v47 = vpop.f32.mrf.mxu0  ;;  %v425_v48 = vpop.f32.mrf.mxu1 }
  0xfb   :  { %273 = vst.msk [vmem:[%s674_s2 + $0x10] sm:$0xff] %vm270_vm0, %v412_v45  ;;  %277 = vst.msk [vmem:[%s674_s2 + $0x30] sm:$0xff] %vm270_vm0, %v424_v46  ;;  %v285_v59 = vsel %vm270_vm0, %v412_v45, 0.0  ;;  %v297_v62 = vsel %vm270_vm0, %v424_v46, 0.0  ;;  %v313_v63 = vmul.f32 %v412_v45, %v412_v45  ;;  %v317_v3 = vmul.f32 %v424_v46, %v424_v46 }
  0xfc   :  { %323 = vadd.xlane.f32.xlu1 %v322_v49  ;;  %320 = vadd.xlane.f32.xlu0 %v319_v50  ;;  %v414_v53 = vpop.f32.mrf.mxu0  ;;  %v426_v54 = vpop.f32.mrf.mxu1 }
  0xfd   :  { %v415_v55 = vadd.f32 %v414_v53, %v413_v47  ;;  %v427_v56 = vadd.f32 %v426_v54, %v425_v48  ;;  %v325_v1 = vsel %vm270_vm0, %v313_v63, 0.0  ;;  %v337_v5 = vsel %vm270_vm0, %v317_v3, 0.0 }
  0xff   :  { %274 = vst.msk [vmem:[%s674_s2 + $0x18] sm:$0xff] %vm270_vm0, %v415_v55  ;;  %278 = vst.msk [vmem:[%s674_s2 + $0x38] sm:$0xff] %vm270_vm0, %v427_v56  ;;  %v288_v61 = vsel %vm270_vm0, %v415_v55, 0.0  ;;  %v300_v0 = vsel %vm270_vm0, %v427_v56, 0.0  ;;  %v314_v2 = vmul.f32 %v415_v55, %v415_v55  ;;  %v318_v6 = vmul.f32 %v427_v56, %v427_v56 }
 0x100   :  { %335 = vadd.xlane.f32.xlu1 %v334_v57  ;;  %332 = vadd.xlane.f32.xlu0 %v331_v58 }
 0x101   :  { %v328_v4 = vsel %vm270_vm0, %v314_v2, 0.0  ;;  %v340_v7 = vsel %vm270_vm0, %v318_v6, 0.0 }
 0x104   :  { %286 = vadd.xlane.f32.xlu1 %v285_v59  ;;  %283 = vadd.xlane.f32.xlu0 %v282_v60 }
 0x108   :  { %289 = vadd.xlane.f32.xlu1 %v288_v61  ;;  %298 = vadd.xlane.f32.xlu0 %v297_v62 }
 0x10c   :  { %301 = vadd.xlane.f32.xlu1 %v300_v0  ;;  %326 = vadd.xlane.f32.xlu0 %v325_v1 }
 0x110   :  { %329 = vadd.xlane.f32.xlu1 %v328_v4  ;;  %338 = vadd.xlane.f32.xlu0 %v337_v5 }
 0x114   :  { %341 = vadd.xlane.f32.xlu1 %v340_v7 }
 0x17d   :  { %v281_v8 = vpop.xlane.xlu0 %280 }
 0x17e   :  { %303 = vst [vmem:[%s675_s3] sm:$0xff] %v281_v8 }
 0x181   :  { %v296_v9 = vpop.xlane.xlu1 %295  ;;  %v293_v10 = vpop.xlane.xlu0 %292 }
 0x182   :  { %308 = vst [vmem:[%s675_s3 + $0x28] sm:$0xff] %v296_v9  ;;  %307 = vst [vmem:[%s675_s3 + $0x20] sm:$0xff] %v293_v10 }
 0x185   :  { %v324_v11 = vpop.xlane.xlu1 %323  ;;  %v321_v12 = vpop.xlane.xlu0 %320 }
 0x186   :  { %344 = vst [vmem:[%s676_s4 + $0x8] sm:$0xff] %v324_v11  ;;  %343 = vst [vmem:[%s676_s4] sm:$0xff] %v321_v12 }
 0x189   :  { %v336_v13 = vpop.xlane.xlu1 %335  ;;  %v333_v14 = vpop.xlane.xlu0 %332 }
 0x18a   :  { %348 = vst [vmem:[%s676_s4 + $0x28] sm:$0xff] %v336_v13  ;;  %347 = vst [vmem:[%s676_s4 + $0x20] sm:$0xff] %v333_v14 }
 0x18d   :  { %v287_v15 = vpop.xlane.xlu1 %286  ;;  %v284_v16 = vpop.xlane.xlu0 %283 }
 0x18e   :  { %305 = vst [vmem:[%s675_s3 + $0x10] sm:$0xff] %v287_v15  ;;  %304 = vst [vmem:[%s675_s3 + $0x8] sm:$0xff] %v284_v16 }
 0x191   :  { %v290_v17 = vpop.xlane.xlu1 %289  ;;  %v299_v18 = vpop.xlane.xlu0 %298 }
 0x192   :  { %306 = vst [vmem:[%s675_s3 + $0x18] sm:$0xff] %v290_v17  ;;  %309 = vst [vmem:[%s675_s3 + $0x30] sm:$0xff] %v299_v18 }
 0x195   :  { %v302_v19 = vpop.xlane.xlu1 %301  ;;  %v327_v20 = vpop.xlane.xlu0 %326 }
 0x196   :  { %310 = vst [vmem:[%s675_s3 + $0x38] sm:$0xff] %v302_v19  ;;  %345 = vst [vmem:[%s676_s4 + $0x10] sm:$0xff] %v327_v20 }
 0x199   :  { %v330_v21 = vpop.xlane.xlu1 %329  ;;  %v339_v22 = vpop.xlane.xlu0 %338 }
 0x19a   :  { %346 = vst [vmem:[%s676_s4 + $0x18] sm:$0xff] %v330_v21  ;;  %349 = vst [vmem:[%s676_s4 + $0x30] sm:$0xff] %v339_v22 }
 0x19d   :  { %v342_v23 = vpop.xlane.xlu1 %341 }
 0x19e   :  { %350 = vst [vmem:[%s676_s4 + $0x38] sm:$0xff] %v342_v23 }
 0x19f   :  { %363 = vsyncpa [#allocation3], 1 }

// kernel: generator_forward.11
= control target key start
LH: loop header
LB: loop body
LE: loop exit
PB: predicated region body
PF: predicated region fallthrough
CT: control target
= control target key end

     0   :  { %s903_s15 = smov 0   ;;  %s905_s16 = smov 0   ;;  %s981_s0 = inlined_call_operand.vmem [shape: bf16[4,32,256], index: 0, kind: input, shape index: {}]   ;;  %s982_s1 = inlined_call_operand.vmem [shape: bf16[4,256,32], index: 1, kind: input, shape index: {}]   ;;  %s983_s2 = inlined_call_operand.vmem [shape: f32[4,32,32], index: 2, kind: output, shape index: {0}]   ;;  %s984_s3 = inlined_call_operand.vmem [shape: f32[4,32,128], index: 3, kind: output, shape index: {1}]   ;;  %s985_s4 = inlined_call_operand.vmem [shape: f32[4,32,128], index: 4, kind: output, shape index: {2}]  }
   0x1   :  { %s907_s17 = smov 0  }
   0x2 LB: > { %s27_s18 = sadd.s32 1, %s872_s16  ;;  %p726_p0 = scmp.ge.s32.totalorder %s876_s17, 1  ;;  %s876_s17 = sphi %s907_s17, %s15_s17   ;;  %s872_s16 = sphi %s905_s16, %s987_s16   ;;  %s868_s15 = sphi %s903_s15, %s986_s15  }
   0x3   : > { %p29_p1 = scmp.ge.s32.totalorder %s27_s18, 4  ;;  %p200_p2 = scmp.lt.s32.totalorder %s876_s17, 5 }
   0x5   : > { %s989_s18 = smov (%p29_p1, %s27_s18), 0  ;;  %p201_p3 = pnand %p726_p0, %p200_p2 }
   0x6   : > { %p253_p4 = scmp.lt.s32.totalorder (!%p201_p3), %s868_s15, 3 }
   0x7   : > { %204 = sbr.rel (%p201_p3) target bundleno = 397 (0x18d), region = 28 }
   0xc   : > { %s991_s15 = smov (!%p253_p4, %s868_s15), 3  ;;  %vm492_vm0 = vcmask 261120  }
   0xd   : > { %s760_s19 = sshll.u32 %s991_s15, 7  ;;  %s934_s23 = sshll.u32 %s991_s15, 5 }
   0xe   : > { %s924_s22 = scalar_lea.vmem %s982_s1, %s760_s19  ;;  %s257_s26 = scalar_lea.vmem %s981_s0, %s934_s23 }
   0xf   : > { %v832_v0 = vld [vmem:[%s924_s22 + $0x78] sm:$0xff]   ;;  %v834_v2 = vld [vmem:[%s924_s22 + $0x70] sm:$0xff]   ;;  %v836_v4 = vld [vmem:[%s924_s22 + $0x68] sm:$0xff]   ;;  %s273_s29 = scalar_lea.vmem %s983_s2, %s934_s23  ;;  %s281_s6 = scalar_lea.vmem %s984_s3, %s934_s23 }
  0x10   : > { %v833_v1 = vld [vmem:[%s924_s22 + $0x38] sm:$0xff]   ;;  %764 = vmatprep.subr.bf16.mxu0 %v832_v0  ;;  %792 = vmatprep.subr.bf16.mxu1 %v832_v0  ;;  %v835_v3 = vld [vmem:[%s924_s22 + $0x30] sm:$0xff]   ;;  %v837_v5 = vld [vmem:[%s924_s22 + $0x28] sm:$0xff]   ;;  %s289_s9 = scalar_lea.vmem %s985_s4, %s934_s23 }
  0x11   : > { %765 = vmatpush3.bf16.msra.mxu0 %v833_v1  ;;  %800 = vmatpush3.bf16.msra.mxu1 %v833_v1  ;;  %v838_v6 = vld [vmem:[%s924_s22 + $0x60] sm:$0xff]   ;;  %v840_v8 = vld [vmem:[%s924_s22 + $0x58] sm:$0xff]   ;;  %v842_v10 = vld [vmem:[%s924_s22 + $0x50] sm:$0xff]  }
  0x12   : > { %766 = vmatprep.subr.bf16.mxu0 %v834_v2  ;;  %793 = vmatprep.subr.bf16.mxu1 %v834_v2  ;;  %v839_v7 = vld [vmem:[%s924_s22 + $0x20] sm:$0xff]   ;;  %v841_v9 = vld [vmem:[%s924_s22 + $0x18] sm:$0xff]   ;;  %v843_v13 = vld [vmem:[%s924_s22 + $0x10] sm:$0xff]  }
  0x13   : > { %v850_v11 = vld [vmem:[%s257_s26 + $0x4] ss:$8 sps:$4 sm:$0xff]   ;;  %v853_v12 = vld [vmem:[%s257_s26 + $0x14] ss:$8 sps:$4 sm:$0xff]   ;;  %v848_v18 = vld [vmem:[%s257_s26] ss:$8 sps:$4 sm:$0xff]  }
  0x14   : > { %v844_v14 = vld [vmem:[%s924_s22 + $0x48] sm:$0xff]   ;;  %475 = vmatprep.mubr.bf16.mxu0 %v850_v11  ;;  %483 = vmatprep.mubr.bf16.mxu1 %v853_v12  ;;  %v846_v16 = vld [vmem:[%s924_s22 + $0x40] sm:$0xff]   ;;  %v851_v19 = vld [vmem:[%s257_s26 + $0x10] ss:$8 sps:$4 sm:$0xff]  }
  0x15   : > { %767 = vmatpush3.bf16.msra.mxu0 %v835_v3  ;;  %801 = vmatpush3.bf16.msra.mxu1 %v835_v3  ;;  %v845_v15 = vld [vmem:[%s924_s22 + $0x8] sm:$0xff]   ;;  %v847_v17 = vld [vmem:[%s924_s22] sm:$0xff]  }
  0x16   : > { %768 = vmatprep.subr.bf16.mxu0 %v836_v4  ;;  %794 = vmatprep.subr.bf16.mxu1 %v836_v4 }
  0x19   : > { %769 = vmatpush3.bf16.msra.mxu0 %v837_v5  ;;  %802 = vmatpush3.bf16.msra.mxu1 %v837_v5 }
  0x1a   : > { %770 = vmatprep.subr.bf16.mxu0 %v838_v6  ;;  %795 = vmatprep.subr.bf16.mxu1 %v838_v6 }
  0x1d   : > { %771 = vmatpush3.bf16.msra.mxu0 %v839_v7  ;;  %803 = vmatpush3.bf16.msra.mxu1 %v839_v7 }
  0x1e   : > { %772 = vmatprep.subr.bf16.mxu0 %v840_v8  ;;  %796 = vmatprep.subr.bf16.mxu1 %v840_v8 }
  0x21   : > { %773 = vmatpush3.bf16.msra.mxu0 %v841_v9  ;;  %804 = vmatpush3.bf16.msra.mxu1 %v841_v9 }
  0x22   : > { %774 = vmatprep.subr.bf16.mxu0 %v842_v10  ;;  %797 = vmatprep.subr.bf16.mxu1 %v842_v10 }
  0x25   : > { %775 = vmatpush3.bf16.msra.mxu0 %v843_v13  ;;  %805 = vmatpush3.bf16.msra.mxu1 %v843_v13 }
  0x26   : > { %776 = vmatprep.subr.bf16.mxu0 %v844_v14  ;;  %798 = vmatprep.subr.bf16.mxu1 %v844_v14 }
  0x29   : > { %777 = vmatpush3.bf16.msra.mxu0 %v845_v15  ;;  %806 = vmatpush3.bf16.msra.mxu1 %v845_v15 }
  0x2a   : > { %778 = vmatprep.subr.bf16.mxu0 %v846_v16  ;;  %799 = vmatprep.subr.bf16.mxu1 %v846_v16 }
  0x2d   : > { %779 = vmatpush3.bf16.msra.mxu0 %v847_v17  ;;  %807 = vmatpush3.bf16.msra.mxu1 %v847_v17 }
  0x30   : > { %476 = vmatmul.mubr.bf16.vlgmr.msra.gmra.mxu0 %v848_v18  ;;  %484 = vmatmul.mubr.bf16.vlgmr.msra.gmra.mxu1 %v851_v19 }
  0xf0   : > { %v780_v20 = vpop.f32.mrf.mxu0  ;;  %v786_v21 = vpop.f32.mrf.mxu1 }
  0xf2   : > { %v781_v22 = vpop.f32.mrf.mxu0  ;;  %v787_v23 = vpop.f32.mrf.mxu1 }
  0xf3   : > { %v782_v24 = vadd.f32 %v781_v22, %v780_v20  ;;  %v788_v25 = vadd.f32 %v787_v23, %v786_v21 }
  0xf4   : > { %v783_v26 = vpop.f32.mrf.mxu0  ;;  %v789_v27 = vpop.f32.mrf.mxu1 }
  0xf5   : > { %493 = vst.msk [vmem:[%s273_s29] sm:$0xff] %vm492_vm0, %v782_v24  ;;  %495 = vst.msk [vmem:[%s273_s29 + $0x10] sm:$0xff] %vm492_vm0, %v788_v25  ;;  %v503_v28 = vsel %vm492_vm0, %v788_v25, 0.0  ;;  %v497_v29 = vsel %vm492_vm0, %v782_v24, 0.0  ;;  %v513_v30 = vmul.f32 %v782_v24, %v782_v24  ;;  %v515_v41 = vmul.f32 %v788_v25, %v788_v25 }
  0xf6   : > { %v790_v31 = vpop.f32.mrf.mxu1  ;;  %504 = vadd.xlane.f32.xlu1 %v503_v28  ;;  %v784_v32 = vpop.f32.mrf.mxu0  ;;  %498 = vadd.xlane.f32.xlu0 %v497_v29 }
  0xf7   : > { %v791_v33 = vadd.f32 %v790_v31, %v789_v27  ;;  %v785_v34 = vadd.f32 %v784_v32, %v783_v26  ;;  %v517_v36 = vsel %vm492_vm0, %v513_v30, 0.0  ;;  %v523_v43 = vsel %vm492_vm0, %v515_v41, 0.0 }
  0xf9   : > { %496 = vst.msk [vmem:[%s273_s29 + $0x18] sm:$0xff] %vm492_vm0, %v791_v33  ;;  %494 = vst.msk [vmem:[%s273_s29 + $0x8] sm:$0xff] %vm492_vm0, %v785_v34  ;;  %v506_v35 = vsel %vm492_vm0, %v791_v33, 0.0  ;;  %v514_v37 = vmul.f32 %v785_v34, %v785_v34  ;;  %v500_v39 = vsel %vm492_vm0, %v785_v34, 0.0  ;;  %v516_v40 = vmul.f32 %v791_v33, %v791_v33 }
  0xfa   : > { %507 = vadd.xlane.f32.xlu1 %v506_v35  ;;  %518 = vadd.xlane.f32.xlu0 %v517_v36 }
  0xfb   : > { %v520_v38 = vsel %vm492_vm0, %v514_v37, 0.0  ;;  %v526_v42 = vsel %vm492_vm0, %v516_v40, 0.0 }
  0xfe   : > { %521 = vadd.xlane.f32.xlu1 %v520_v38  ;;  %501 = vadd.xlane.f32.xlu0 %v500_v39 }
 0x102   : > { %527 = vadd.xlane.f32.xlu1 %v526_v42  ;;  %524 = vadd.xlane.f32.xlu0 %v523_v43 }
 0x17f   : > { %v505_v44 = vpop.xlane.xlu1 %504  ;;  %v499_v45 = vpop.xlane.xlu0 %498 }
 0x180   : > { %511 = vst [vmem:[%s281_s6 + $0x10] sm:$0xff] %v505_v44  ;;  %509 = vst [vmem:[%s281_s6] sm:$0xff] %v499_v45 }
 0x183   : > { %v508_v46 = vpop.xlane.xlu1 %507  ;;  %v519_v47 = vpop.xlane.xlu0 %518 }
 0x184   : > { %512 = vst [vmem:[%s281_s6 + $0x18] sm:$0xff] %v508_v46  ;;  %529 = vst [vmem:[%s289_s9] sm:$0xff] %v519_v47 }
 0x187   : > { %v522_v48 = vpop.xlane.xlu1 %521  ;;  %v502_v49 = vpop.xlane.xlu0 %501 }
 0x188   : > { %530 = vst [vmem:[%s289_s9 + $0x8] sm:$0xff] %v522_v48  ;;  %510 = vst [vmem:[%s281_s6 + $0x8] sm:$0xff] %v502_v49 }
 0x18b   : > { %v528_v50 = vpop.xlane.xlu1 %527  ;;  %v525_v51 = vpop.xlane.xlu0 %524 }
 0x18c   : > { %532 = vst [vmem:[%s289_s9 + $0x18] sm:$0xff] %v528_v50  ;;  %531 = vst [vmem:[%s289_s9 + $0x10] sm:$0xff] %v525_v51 }
 0x18d PF: > { %s15_s17 = sadd.s32 1, %s876_s17   ;;  %s986_s15 = smov %s872_s16 }
 0x18e   : > { %p12_p5 = scmp.ge.s32.totalorder %s15_s17, 6   ;;  %s987_s16 = smov %s989_s18 }
 0x190   :  { %14 = sbr.rel (!%p12_p5) target bundleno = 2 (0x2), region = 85 }

// kernel: generator_forward.12
= control target key start
LH: loop header
LB: loop body
LE: loop exit
PB: predicated region body
PF: predicated region fallthrough
CT: control target
= control target key end

     0   :  { %s439_s12 = smov 0   ;;  %s441_s13 = smov 0   ;;  %s500_s0 = inlined_call_operand.vmem [shape: f32[4,32,32], index: 0, kind: input, shape index: {}]   ;;  %s501_s1 = inlined_call_operand.vmem [shape: f32[32,1], index: 1, kind: input, shape index: {}]   ;;  %s502_s2 = inlined_call_operand.vmem [shape: f32[32,1], index: 2, kind: input, shape index: {}]   ;;  %s503_s3 = inlined_call_operand.vmem [shape: f32[4,32,32], index: 3, kind: output, shape index: {}]  }
   0x1   :  { %s443_s14 = smov 0  }
   0x2 LB: > { %s25_s15 = sadd.s32 1, %s412_s13  ;;  %p358_p0 = scmp.ge.s32.totalorder %s416_s14, 1  ;;  %s416_s14 = sphi %s443_s14, %s13_s14   ;;  %s412_s13 = sphi %s441_s13, %s505_s13   ;;  %s408_s12 = sphi %s439_s12, %s504_s12  }
   0x3   : > { %p27_p1 = scmp.ge.s32.totalorder %s25_s15, 4  ;;  %p156_p2 = scmp.lt.s32.totalorder %s416_s14, 5 }
   0x5   : > { %s507_s15 = smov (%p27_p1, %s25_s15), 0  ;;  %p157_p3 = pnand %p358_p0, %p156_p2 }
   0x6   : > { %p186_p4 = scmp.lt.s32.totalorder (!%p157_p3), %s408_s12, 3 }
   0x7   : > { %160 = sbr.rel (%p157_p3) target bundleno = 155 (0x9b), region = 32 }
   0xc   : > { %v208_v0 = vld [vmem:[%s501_s1 + $0x10] sm:$0xff]  ;;  %v206_v1 = vld [vmem:[%s501_s1] sm:$0xff]  ;;  %v418_v2 = vmov 0   ;;  %v209_v3 = vld [vmem:[%s501_s1 + $0x18] sm:$0xff]  ;;  %s509_s12 = smov (!%p186_p4, %s408_s12), 3  ;;  %vm266_vm0 = vcmask 261120  }
   0xd   : > { %393 = vset.pattern.permute.xlu1 %v418_v2  ;;  %392 = vset.pattern.permute.xlu0 %v418_v2  ;;  %v207_v4 = vld [vmem:[%s501_s1 + $0x8] sm:$0xff]  ;;  %v234_v6 = vld [vmem:[%s502_s2] sm:$0xff]  ;;  %v237_v7 = vld [vmem:[%s502_s2 + $0x18] sm:$0xff]  ;;  %s365_s5 = sshll.u32 %s509_s12, 5 }
   0xe   : > { %222 = vperm.xlu1 %393, %v208_v0   ;;  %212 = vperm.xlu0 %392, %v206_v1   ;;  %v235_v5 = vld [vmem:[%s502_s2 + $0x8] sm:$0xff]  ;;  %v236_v8 = vld [vmem:[%s502_s2 + $0x10] sm:$0xff]  ;;  %s193_s8 = scalar_lea.vmem %s500_s0, %s365_s5  ;;  %s201_s11 = scalar_lea.vmem %s503_s3, %s365_s5 }
   0xf   : > { %v202_v11 = vld [vmem:[%s193_s8] sm:$0xff]  ;;  %v203_v14 = vld [vmem:[%s193_s8 + $0x8] sm:$0xff]  ;;  %v204_v17 = vld [vmem:[%s193_s8 + $0x10] sm:$0xff] }
  0x10   : > { %v205_v18 = vld [vmem:[%s193_s8 + $0x18] sm:$0xff] }
  0x12   : > { %227 = vperm.xlu1 %393, %v209_v3   ;;  %217 = vperm.xlu0 %392, %v207_v4  }
  0x16   : > { %245 = vperm.xlu1 %393, %v235_v5   ;;  %240 = vperm.xlu0 %392, %v234_v6  }
  0x1a   : > { %255 = vperm.xlu1 %393, %v237_v7   ;;  %250 = vperm.xlu0 %392, %v236_v8  }
  0x89   : > { %v223_v9 = vpop.permute.xlu1 %222  ;;  %v213_v10 = vpop.permute.xlu0 %212 }
  0x8a   : > { %v230_v15 = vmul.f32 %v213_v10, %v202_v11  ;;  %v232_v23 = vmul.f32 %v223_v9, %v204_v17 }
  0x8d   : > { %v228_v12 = vpop.permute.xlu1 %227  ;;  %v218_v13 = vpop.permute.xlu0 %217 }
  0x8e   : > { %v231_v16 = vmul.f32 %v218_v13, %v203_v14  ;;  %v233_v24 = vmul.f32 %v228_v12, %v205_v18 }
  0x91   : > { %v246_v19 = vpop.permute.xlu1 %245  ;;  %v241_v20 = vpop.permute.xlu0 %240 }
  0x92   : > { %v259_v21 = vadd.f32 %v246_v19, %v231_v16  ;;  %v258_v22 = vadd.f32 %v241_v20, %v230_v15 }
  0x94   : > { %v263_v25 = vmax.f32 %v259_v21, 0.0  ;;  %v262_v26 = vmax.f32 %v258_v22, 0.0 }
  0x95   : > { %v256_v27 = vpop.permute.xlu1 %255  ;;  %v251_v28 = vpop.permute.xlu0 %250 }
  0x96   : > { %268 = vst.msk [vmem:[%s201_s11 + $0x8] sm:$0xff] %vm266_vm0, %v263_v25  ;;  %267 = vst.msk [vmem:[%s201_s11] sm:$0xff] %vm266_vm0, %v262_v26  ;;  %v261_v29 = vadd.f32 %v256_v27, %v233_v24  ;;  %v260_v30 = vadd.f32 %v251_v28, %v232_v23 }
  0x98   : > { %v265_v31 = vmax.f32 %v261_v29, 0.0  ;;  %v264_v32 = vmax.f32 %v260_v30, 0.0 }
  0x9a   : > { %270 = vst.msk [vmem:[%s201_s11 + $0x18] sm:$0xff] %vm266_vm0, %v265_v31  ;;  %269 = vst.msk [vmem:[%s201_s11 + $0x10] sm:$0xff] %vm266_vm0, %v264_v32 }
  0x9b PF: > { %s13_s14 = sadd.s32 1, %s416_s14   ;;  %s504_s12 = smov %s412_s13 }
  0x9c   : > { %p10_p5 = scmp.ge.s32.totalorder %s13_s14, 6   ;;  %s505_s13 = smov %s507_s15 }
  0x9e   :  { %12 = sbr.rel (!%p10_p5) target bundleno = 2 (0x2), region = 62 }

// kernel: generator_forward.13
= control target key start
LH: loop header
LB: loop body
LE: loop exit
PB: predicated region body
PF: predicated region fallthrough
CT: control target
= control target key end

     0   :  { %s755_s15 = smov 0   ;;  %s757_s16 = smov 0   ;;  %s797_s0 = inlined_call_operand.vmem [shape: bf16[4,16,128], index: 0, kind: input, shape index: {}]   ;;  %s798_s1 = inlined_call_operand.vmem [shape: bf16[4,128,128], index: 1, kind: input, shape index: {}]   ;;  %s799_s2 = inlined_call_operand.vmem [shape: f32[4,16,128], index: 2, kind: output, shape index: {0}]   ;;  %s800_s3 = inlined_call_operand.vmem [shape: f32[4,16,128], index: 3, kind: output, shape index: {1}]   ;;  %s801_s4 = inlined_call_operand.vmem [shape: f32[4,16,128], index: 4, kind: output, shape index: {2}]  }
   0x1   :  { %s759_s17 = smov 0  }
   0x2 LB: > { %s27_s18 = sadd.s32 1, %s722_s16  ;;  %p613_p0 = scmp.ge.s32.totalorder %s726_s17, 1  ;;  %s726_s17 = sphi %s759_s17, %s15_s17   ;;  %s722_s16 = sphi %s757_s16, %s803_s16   ;;  %s718_s15 = sphi %s755_s15, %s802_s15  }
   0x3   : > { %p29_p1 = scmp.ge.s32.totalorder %s27_s18, 4  ;;  %p200_p2 = scmp.lt.s32.totalorder %s726_s17, 5 }
   0x5   : > { %s805_s18 = smov (%p29_p1, %s27_s18), 0  ;;  %p201_p3 = pnand %p613_p0, %p200_p2 }
   0x6   : > { %p253_p4 = scmp.lt.s32.totalorder (!%p201_p3), %s718_s15, 3 }
   0x7   : > { %204 = sbr.rel (%p201_p3) target bundleno = 385 (0x181), region = 28 }
   0xc   : > { %v728_v0 = vmov 0.0   ;;  %vm729_vm0 = vmmov 0   ;;  %s807_s15 = smov (!%p253_p4, %s718_s15), 3 }
   0xd   : > { %649 = vmatprep.subr.bf16.mxu0 %v728_v0  ;;  %665 = vmatprep.mubr.msk.bf16.mxu0 %vm729_vm0, %v728_v0  ;;  %s636_s19 = sshll.u32 %s807_s15, 6  ;;  %s635_s23 = sshll.u32 %s807_s15, 3 }
   0xe   : > { %s265_s22 = scalar_lea.vmem %s798_s1, %s636_s19  ;;  %s257_s26 = scalar_lea.vmem %s797_s0, %s635_s23 }
   0xf   : > { %v695_v1 = vld [vmem:[%s265_s22 + $0x38] sm:$0xff]   ;;  %v696_v2 = vld [vmem:[%s265_s22 + $0x30] sm:$0xff]   ;;  %v697_v3 = vld [vmem:[%s265_s22 + $0x28] sm:$0xff]   ;;  %s637_s27 = sshll.u32 %s807_s15, 4 }
  0x10   : > { %650 = vmatpush3.bf16.msra.mxu0 %v695_v1  ;;  %v698_v4 = vld [vmem:[%s265_s22 + $0x20] sm:$0xff]   ;;  %v699_v5 = vld [vmem:[%s265_s22 + $0x18] sm:$0xff]   ;;  %v700_v6 = vld [vmem:[%s265_s22 + $0x10] sm:$0xff]   ;;  %s273_s30 = scalar_lea.vmem %s799_s2, %s637_s27  ;;  %s281_s7 = scalar_lea.vmem %s800_s3, %s637_s27 }
  0x11   : > { %651 = vmatprep.subr.bf16.mxu0 %v728_v0  ;;  %v701_v7 = vld [vmem:[%s265_s22 + $0x8] sm:$0xff]   ;;  %v702_v8 = vld [vmem:[%s265_s22] sm:$0xff]   ;;  %s289_s10 = scalar_lea.vmem %s801_s4, %s637_s27 }
  0x12   : > { %v703_v9 = vld [vmem:[%s257_s26] sm:$0xff]  }
  0x14   : > { %652 = vmatpush3.bf16.msra.mxu0 %v696_v2 }
  0x15   : > { %653 = vmatprep.subr.bf16.mxu0 %v728_v0 }
  0x18   : > { %654 = vmatpush3.bf16.msra.mxu0 %v697_v3 }
  0x19   : > { %655 = vmatprep.subr.bf16.mxu0 %v728_v0 }
  0x1c   : > { %656 = vmatpush3.bf16.msra.mxu0 %v698_v4 }
  0x1d   : > { %657 = vmatprep.subr.bf16.mxu0 %v728_v0 }
  0x20   : > { %658 = vmatpush3.bf16.msra.mxu0 %v699_v5 }
  0x21   : > { %659 = vmatprep.subr.bf16.mxu0 %v728_v0 }
  0x24   : > { %660 = vmatpush3.bf16.msra.mxu0 %v700_v6 }
  0x25   : > { %661 = vmatprep.subr.bf16.mxu0 %v728_v0 }
  0x28   : > { %662 = vmatpush3.bf16.msra.mxu0 %v701_v7 }
  0x29   : > { %663 = vmatprep.subr.bf16.mxu0 %v728_v0 }
  0x2c   : > { %664 = vmatpush3.bf16.msra.mxu0 %v702_v8 }
  0x2f   : > { %666 = vmatmul.mubr.bf16.vlgmr.msra.gmra.mxu0 %v703_v9 }
  0xef   : > { %v397_v10 = vpop.f32.mrf.mxu0 }
  0xf0   : > { %404 = vst [vmem:[%s273_s30] sm:$0xff] %v397_v10  ;;  %406 = vadd.xlane.f32.xlu0 %v397_v10  ;;  %v412_v11 = vmul.f32 %v397_v10, %v397_v10 }
  0xf1   : > { %v667_v12 = vpop.f32.mrf.mxu0 }
  0xf2   : > { %414 = vadd.xlane.f32.xlu1 %v412_v11 }
  0xf3   : > { %v400_v13 = vpop.f32.mrf.mxu0 }
  0xf4   : > { %405 = vst [vmem:[%s273_s30 + $0x8] sm:$0xff] %v400_v13  ;;  %408 = vadd.xlane.f32.xlu0 %v400_v13  ;;  %v413_v14 = vmul.f32 %v400_v13, %v400_v13 }
  0xf5   : > { %v668_v15 = vpop.f32.mrf.mxu0 }
  0xf6   : > { %416 = vadd.xlane.f32.xlu1 %v413_v14 }
 0x179   : > { %v407_v16 = vpop.xlane.xlu0 %406 }
 0x17a   : > { %410 = vst [vmem:[%s281_s7] sm:$0xff] %v407_v16 }
 0x17b   : > { %v415_v17 = vpop.xlane.xlu1 %414 }
 0x17c   : > { %418 = vst [vmem:[%s289_s10] sm:$0xff] %v415_v17 }
 0x17d   : > { %v409_v18 = vpop.xlane.xlu0 %408 }
 0x17e   : > { %411 = vst [vmem:[%s281_s7 + $0x8] sm:$0xff] %v409_v18 }
 0x17f   : > { %v417_v19 = vpop.xlane.xlu1 %416 }
 0x180   : > { %419 = vst [vmem:[%s289_s10 + $0x8] sm:$0xff] %v417_v19 }
 0x181 PF: > { %s15_s17 = sadd.s32 1, %s726_s17   ;;  %s802_s15 = smov %s722_s16 }
 0x182   : > { %p12_p5 = scmp.ge.s32.totalorder %s15_s17, 6   ;;  %s803_s16 = smov %s805_s18 }
 0x184   :  { %14 = sbr.rel (!%p12_p5) target bundleno = 2 (0x2), region = 85 }

// kernel: generator_forward.14
= control target key start
LH: loop header
LB: loop body
LE: loop exit
PB: predicated region body
PF: predicated region fallthrough
CT: control target
= control target key end

     0   :  { %s404_s12 = smov 0   ;;  %s406_s13 = smov 0   ;;  %s449_s0 = inlined_call_operand.vmem [shape: f32[4,16,128], index: 0, kind: input, shape index: {}]   ;;  %s450_s1 = inlined_call_operand.vmem [shape: f32[16,1], index: 1, kind: input, shape index: {}]   ;;  %s451_s2 = inlined_call_operand.vmem [shape: f32[16,1], index: 2, kind: input, shape index: {}]   ;;  %s452_s3 = inlined_call_operand.vmem [shape: f32[4,16,128], index: 3, kind: output, shape index: {}]  }
   0x1   :  { %s408_s14 = smov 0  }
   0x2 LB: > { %s25_s15 = sadd.s32 1, %s377_s13  ;;  %p323_p0 = scmp.ge.s32.totalorder %s381_s14, 1  ;;  %s381_s14 = sphi %s408_s14, %s13_s14   ;;  %s377_s13 = sphi %s406_s13, %s454_s13   ;;  %s373_s12 = sphi %s404_s12, %s453_s12  }
   0x3   : > { %p27_p1 = scmp.ge.s32.totalorder %s25_s15, 4  ;;  %p156_p2 = scmp.lt.s32.totalorder %s381_s14, 5 }
   0x5   : > { %s456_s15 = smov (%p27_p1, %s25_s15), 0  ;;  %p157_p3 = pnand %p323_p0, %p156_p2 }
   0x6   : > { %p186_p4 = scmp.lt.s32.totalorder (!%p157_p3), %s373_s12, 3 }
   0x7   : > { %160 = sbr.rel (%p157_p3) target bundleno = 149 (0x95), region = 32 }
   0xc   : > { %v218_v0 = vld [vmem:[%s451_s2] sm:$0xff]  ;;  %v383_v2 = vmov 0   ;;  %v219_v3 = vld [vmem:[%s451_s2 + $0x8] sm:$0xff]  ;;  %s458_s12 = smov (!%p186_p4, %s373_s12), 3 }
   0xd   : > { %v204_v1 = vld [vmem:[%s450_s1] sm:$0xff]  ;;  %358 = vset.pattern.permute.xlu1 %v383_v2  ;;  %357 = vset.pattern.permute.xlu0 %v383_v2  ;;  %v205_v4 = vld [vmem:[%s450_s1 + $0x8] sm:$0xff]  ;;  %s330_s24 = sshll.u32 %s458_s12, 4 }
   0xe   : > { %222 = vperm.xlu1 %358, %v218_v0   ;;  %208 = vperm.xlu0 %357, %v204_v1   ;;  %s193_s27 = scalar_lea.vmem %s449_s0, %s330_s24  ;;  %s201_s30 = scalar_lea.vmem %s452_s3, %s330_s24 }
   0xf   : > { %v202_v5 = vld [vmem:[%s193_s27] sm:$0xff]  ;;  %v203_v9 = vld [vmem:[%s193_s27 + $0x8] sm:$0xff] }
  0x12   : > { %227 = vperm.xlu1 %358, %v219_v3   ;;  %213 = vperm.xlu0 %357, %v205_v4  }
  0x89   : > { %v223_v6 = vpop.permute.xlu1 %222  ;;  %v209_v7 = vpop.permute.xlu0 %208 }
  0x8a   : > { %v216_v8 = vmul.f32 %v209_v7, %v202_v5 }
  0x8c   : > { %v230_v10 = vadd.f32 %v223_v6, %v216_v8 }
  0x8d   : > { %v214_v11 = vpop.permute.xlu0 %213  ;;  %v228_v14 = vpop.permute.xlu1 %227 }
  0x8e   : > { %v232_v12 = vmax.f32 %v230_v10, 0.0  ;;  %v217_v13 = vmul.f32 %v214_v11, %v203_v9 }
  0x90   : > { %234 = vst [vmem:[%s201_s30] sm:$0xff] %v232_v12  ;;  %v231_v15 = vadd.f32 %v228_v14, %v217_v13 }
  0x92   : > { %v233_v16 = vmax.f32 %v231_v15, 0.0 }
  0x94   : > { %235 = vst [vmem:[%s201_s30 + $0x8] sm:$0xff] %v233_v16 }
  0x95 PF: > { %s13_s14 = sadd.s32 1, %s381_s14   ;;  %s453_s12 = smov %s377_s13 }
  0x96   : > { %p10_p5 = scmp.ge.s32.totalorder %s13_s14, 6   ;;  %s454_s13 = smov %s456_s15 }
  0x98   :  { %12 = sbr.rel (!%p10_p5) target bundleno = 2 (0x2), region = 62 }

// kernel: generator_forward.15
= control target key start
LH: loop header
LB: loop body
LE: loop exit
PB: predicated region body
PF: predicated region fallthrough
CT: control target
= control target key end

     0   :  { %s809_s15 = smov 0   ;;  %s811_s16 = smov 0   ;;  %s857_s0 = inlined_call_operand.vmem [shape: bf16[4,8,64], index: 0, kind: input, shape index: {}]   ;;  %s858_s1 = inlined_call_operand.vmem [shape: bf16[4,64,512], index: 1, kind: input, shape index: {}]   ;;  %s859_s2 = inlined_call_operand.vmem [shape: f32[4,8,512], index: 2, kind: output, shape index: {0}]   ;;  %s860_s3 = inlined_call_operand.vmem [shape: f32[4,8,128], index: 3, kind: output, shape index: {1}]   ;;  %s861_s4 = inlined_call_operand.vmem [shape: f32[4,8,128], index: 4, kind: output, shape index: {2}]  }
   0x1   :  { %s813_s17 = smov 0  }
   0x2 LB: > { %s27_s18 = sadd.s32 1, %s777_s16  ;;  %p680_p0 = scmp.ge.s32.totalorder %s781_s17, 1  ;;  %s781_s17 = sphi %s813_s17, %s15_s17   ;;  %s777_s16 = sphi %s811_s16, %s863_s16   ;;  %s773_s15 = sphi %s809_s15, %s862_s15  }
   0x3   : > { %p29_p1 = scmp.ge.s32.totalorder %s27_s18, 4  ;;  %p201_p2 = scmp.lt.s32.totalorder %s781_s17, 5 }
   0x5   : > { %s865_s18 = smov (%p29_p1, %s27_s18), 0  ;;  %p202_p3 = pnand %p680_p0, %p201_p2 }
   0x6   : > { %p253_p4 = scmp.lt.s32.totalorder (!%p202_p3), %s773_s15, 3 }
   0x7   : > { %205 = sbr.rel (%p202_p3) target bundleno = 376 (0x178), region = 28 }
   0xc   : > { %v783_v0 = vmov 0   ;;  %s867_s15 = smov (!%p253_p4, %s773_s15), 3  ;;  %vm389_vm0 = vcmask 523264  }
   0xd   : > { %425 = vmatprep.mubr.bf16.mxu0 %v783_v0  ;;  %466 = vmatprep.mubr.bf16.mxu1 %v783_v0  ;;  %s708_s19 = sshll.u32 %s867_s15, 7  ;;  %s681_s23 = sshll.u32 %s867_s15, 2 }
   0xe   : > { %s265_s22 = scalar_lea.vmem %s858_s1, %s708_s19  ;;  %s256_s26 = scalar_lea.vmem %s857_s0, %s681_s23 }
   0xf   : > { %v735_v1 = vld [vmem:[%s265_s22 + $0x64] ss:$16 sps:$4 sm:$0xff]   ;;  %v737_v2 = vld [vmem:[%s265_s22 + $0x6c] ss:$16 sps:$4 sm:$0xff]   ;;  %v739_v3 = vld [vmem:[%s265_s22 + $0x60] ss:$16 sps:$4 sm:$0xff]  }
  0x10   : > { %401 = vmatprep.subr.bf16.mxu0 %v735_v1  ;;  %v740_v4 = vld [vmem:[%s265_s22 + $0x68] ss:$16 sps:$4 sm:$0xff]   ;;  %442 = vmatprep.subr.bf16.mxu1 %v737_v2  ;;  %v741_v5 = vld [vmem:[%s265_s22 + $0x44] ss:$16 sps:$4 sm:$0xff]   ;;  %v743_v6 = vld [vmem:[%s265_s22 + $0x4c] ss:$16 sps:$4 sm:$0xff]  }
  0x11   : > { %402 = vmatpush1.bf16.msra.mxu0 %v739_v3  ;;  %443 = vmatpush1.bf16.msra.mxu1 %v740_v4  ;;  %v745_v7 = vld [vmem:[%s265_s22 + $0x40] ss:$16 sps:$4 sm:$0xff]   ;;  %v746_v8 = vld [vmem:[%s265_s22 + $0x48] ss:$16 sps:$4 sm:$0xff]   ;;  %v747_v9 = vld [vmem:[%s265_s22 + $0x24] ss:$16 sps:$4 sm:$0xff]  }
  0x12   : > { %403 = vmatprep.subr.bf16.mxu0 %v741_v5  ;;  %444 = vmatprep.subr.bf16.mxu1 %v743_v6  ;;  %v749_v10 = vld [vmem:[%s265_s22 + $0x2c] ss:$16 sps:$4 sm:$0xff]   ;;  %v751_v11 = vld [vmem:[%s265_s22 + $0x20] ss:$16 sps:$4 sm:$0xff]   ;;  %v752_v12 = vld [vmem:[%s265_s22 + $0x28] ss:$16 sps:$4 sm:$0xff]  }
  0x13   : > { %v753_v13 = vld [vmem:[%s265_s22 + $0x4] ss:$16 sps:$4 sm:$0xff]   ;;  %v755_v14 = vld [vmem:[%s265_s22 + $0xc] ss:$16 sps:$4 sm:$0xff]   ;;  %v757_v15 = vld [vmem:[%s265_s22] ss:$16 sps:$4 sm:$0xff]  }
  0x14   : > { %v758_v16 = vld [vmem:[%s265_s22 + $0x8] ss:$16 sps:$4 sm:$0xff]   ;;  %v292_v17 = vld [vmem:[%s256_s26] sm:$0xf]  ;;  %s709_s27 = sshll.u32 %s867_s15, 5  ;;  %s686_s5 = sshll.u32 %s867_s15, 3 }
  0x15   : > { %404 = vmatpush1.bf16.msra.mxu0 %v745_v7  ;;  %445 = vmatpush1.bf16.msra.mxu1 %v746_v8  ;;  %s275_s30 = scalar_lea.vmem %s859_s2, %s709_s27  ;;  %s283_s8 = scalar_lea.vmem %s860_s3, %s686_s5 }
  0x16   : > { %405 = vmatprep.subr.bf16.mxu0 %v747_v9  ;;  %446 = vmatprep.subr.bf16.mxu1 %v749_v10  ;;  %s290_s11 = scalar_lea.vmem %s861_s4, %s686_s5 }
  0x19   : > { %406 = vmatpush1.bf16.msra.mxu0 %v751_v11  ;;  %447 = vmatpush1.bf16.msra.mxu1 %v752_v12 }
  0x1a   : > { %407 = vmatprep.subr.bf16.mxu0 %v753_v13  ;;  %448 = vmatprep.subr.bf16.mxu1 %v755_v14 }
  0x1d   : > { %408 = vmatpush1.bf16.msra.mxu0 %v757_v15  ;;  %449 = vmatpush1.bf16.msra.mxu1 %v758_v16 }
  0x20   : > { %704 = vmatmul.mubr.msk.bf16.vlgmr.msra.gmra.mxu0 %vm389_vm0, %v292_v17  ;;  %705 = vmatmul.mubr.msk.bf16.vlgmr.msra.gmra.mxu1 %vm389_vm0, %v292_v17 }
  0xe0   : > { %v427_v18 = vpop.f32.mrf.mxu0  ;;  %v468_v19 = vpop.f32.mrf.mxu1 }
  0xe1   : > { %475 = vst [vmem:[%s275_s30] sm:$0xff] %v427_v18  ;;  %477 = vst [vmem:[%s275_s30 + $0x10] sm:$0xff] %v468_v19  ;;  %v485_v22 = vmul.f32 %v427_v18, %v427_v18  ;;  %v487_v23 = vmul.f32 %v468_v19, %v468_v19 }
  0xe2   : > { %v429_v20 = vpop.f32.mrf.mxu0  ;;  %v470_v21 = vpop.f32.mrf.mxu1 }
  0xe3   : > { %476 = vst [vmem:[%s275_s30 + $0x8] sm:$0xff] %v429_v20  ;;  %v479_v24 = vadd.f32 %v429_v20, %v427_v18  ;;  %v486_v25 = vmul.f32 %v429_v20, %v429_v20  ;;  %478 = vst [vmem:[%s275_s30 + $0x18] sm:$0xff] %v470_v21  ;;  %v488_v34 = vmul.f32 %v470_v21, %v470_v21 }
  0xe4   : > { %v431_v26 = vpop.f32.mrf.mxu0  ;;  %v472_v27 = vpop.f32.mrf.mxu1 }
  0xe5   : > { %v480_v28 = vadd.f32 %v479_v24, %v468_v19  ;;  %v489_v29 = vadd.f32 %v486_v25, %v485_v22 }
  0xe6   : > { %v432_v30 = vpop.f32.mrf.mxu0  ;;  %v473_v31 = vpop.f32.mrf.mxu1 }
  0xe7   : > { %v481_v32 = vadd.f32 %v480_v28, %v470_v21  ;;  %v490_v33 = vadd.f32 %v489_v29, %v487_v23 }
  0xe9   : > { %482 = vadd.xlane.f32.xlu0 %v481_v32  ;;  %v491_v35 = vadd.f32 %v490_v33, %v488_v34 }
  0xed   : > { %492 = vadd.xlane.f32.xlu0 %v491_v35 }
 0x172   : > { %v483_v36 = vpop.xlane.xlu0 %482 }
 0x173   : > { %484 = vst [vmem:[%s283_s8] sm:$0xff] %v483_v36 }
 0x176   : > { %v493_v37 = vpop.xlane.xlu0 %492 }
 0x177   : > { %494 = vst [vmem:[%s290_s11] sm:$0xff] %v493_v37 }
 0x178 PF: > { %s15_s17 = sadd.s32 1, %s781_s17   ;;  %s862_s15 = smov %s777_s16 }
 0x179   : > { %p12_p5 = scmp.ge.s32.totalorder %s15_s17, 6   ;;  %s863_s16 = smov %s865_s18 }
 0x17b   :  { %14 = sbr.rel (!%p12_p5) target bundleno = 2 (0x2), region = 85 }

// kernel: generator_forward.16
= control target key start
LH: loop header
LB: loop body
LE: loop exit
PB: predicated region body
PF: predicated region fallthrough
CT: control target
= control target key end

     0   :  { %s413_s12 = smov 0   ;;  %s415_s13 = smov 0   ;;  %s452_s0 = inlined_call_operand.vmem [shape: f32[4,8,512], index: 0, kind: input, shape index: {}]   ;;  %s453_s1 = inlined_call_operand.vmem [shape: f32[8,1], index: 1, kind: input, shape index: {}]   ;;  %s454_s2 = inlined_call_operand.vmem [shape: f32[8,1], index: 2, kind: input, shape index: {}]   ;;  %s455_s3 = inlined_call_operand.vmem [shape: f32[4,8,512], index: 3, kind: output, shape index: {}]  }
   0x1   :  { %s417_s14 = smov 0  }
   0x2 LB: > { %s25_s15 = sadd.s32 1, %s386_s13  ;;  %p333_p0 = scmp.ge.s32.totalorder %s390_s14, 1  ;;  %s390_s14 = sphi %s417_s14, %s13_s14   ;;  %s386_s13 = sphi %s415_s13, %s457_s13   ;;  %s382_s12 = sphi %s413_s12, %s456_s12  }
   0x3   : > { %p27_p1 = scmp.ge.s32.totalorder %s25_s15, 4  ;;  %p158_p2 = scmp.lt.s32.totalorder %s390_s14, 5 }
   0x5   : > { %s459_s15 = smov (%p27_p1, %s25_s15), 0  ;;  %p159_p3 = pnand %p333_p0, %p158_p2 }
   0x6   : > { %p191_p4 = scmp.lt.s32.totalorder (!%p159_p3), %s382_s12, 3 }
   0x7   : > { %162 = sbr.rel (%p159_p3) target bundleno = 148 (0x94), region = 32 }
   0xc   : > { %v214_v0 = vld [vmem:[%s453_s1] sm:$0xff]  ;;  %v392_v1 = vmov 0   ;;  %s461_s12 = smov (!%p191_p4, %s382_s12), 3 }
   0xd   : > { %367 = vset.pattern.permute.xlu0 %v392_v1  ;;  %v224_v2 = vld [vmem:[%s454_s2] sm:$0xff]  ;;  %s340_s20 = sshll.u32 %s461_s12, 5 }
   0xe   : > { %217 = vperm.xlu0 %367, %v214_v0   ;;  %s198_s23 = scalar_lea.vmem %s452_s0, %s340_s20  ;;  %s208_s26 = scalar_lea.vmem %s455_s3, %s340_s20 }
   0xf   : > { %v210_v3 = vld [vmem:[%s198_s23] sm:$0xff]  ;;  %v211_v5 = vld [vmem:[%s198_s23 + $0x8] sm:$0xff]  ;;  %v212_v6 = vld [vmem:[%s198_s23 + $0x10] sm:$0xff] }
  0x10   : > { %v213_v7 = vld [vmem:[%s198_s23 + $0x18] sm:$0xff] }
  0x12   : > { %227 = vperm.xlu0 %367, %v224_v2  }
  0x89   : > { %v218_v4 = vpop.permute.xlu0 %217 }
  0x8a   : > { %v220_v8 = vmul.f32 %v218_v4, %v210_v3  ;;  %v221_v9 = vmul.f32 %v218_v4, %v211_v5  ;;  %v222_v10 = vmul.f32 %v218_v4, %v212_v6  ;;  %v223_v11 = vmul.f32 %v218_v4, %v213_v7 }
  0x8d   : > { %v228_v12 = vpop.permute.xlu0 %227 }
  0x8e   : > { %v230_v13 = vadd.f32 %v228_v12, %v220_v8  ;;  %v231_v14 = vadd.f32 %v228_v12, %v221_v9  ;;  %v232_v15 = vadd.f32 %v228_v12, %v222_v10  ;;  %v233_v16 = vadd.f32 %v228_v12, %v223_v11 }
  0x90   : > { %v234_v17 = vmax.f32 %v230_v13, 0.0  ;;  %v235_v18 = vmax.f32 %v231_v14, 0.0  ;;  %v236_v19 = vmax.f32 %v232_v15, 0.0  ;;  %v237_v20 = vmax.f32 %v233_v16, 0.0 }
  0x92   : > { %238 = vst [vmem:[%s208_s26] sm:$0xff] %v234_v17  ;;  %239 = vst [vmem:[%s208_s26 + $0x8] sm:$0xff] %v235_v18 }
  0x93   : > { %240 = vst [vmem:[%s208_s26 + $0x10] sm:$0xff] %v236_v19  ;;  %241 = vst [vmem:[%s208_s26 + $0x18] sm:$0xff] %v237_v20 }
  0x94 PF: > { %s13_s14 = sadd.s32 1, %s390_s14   ;;  %s456_s12 = smov %s386_s13 }
  0x95   : > { %p10_p5 = scmp.ge.s32.totalorder %s13_s14, 6   ;;  %s457_s13 = smov %s459_s15 }
  0x97   :  { %12 = sbr.rel (!%p10_p5) target bundleno = 2 (0x2), region = 62 }

// kernel: generator_forward.17
= control target key start
LH: loop header
LB: loop body
LE: loop exit
PB: predicated region body
PF: predicated region fallthrough
CT: control target
= control target key end

     0   :  { %s1071_s12 = smov 0   ;;  %s1073_s13 = smov 0   ;;  %s1204_s0 = inlined_call_operand.vmem [shape: bf16[4,3,32], index: 0, kind: input, shape index: {}]   ;;  %s1205_s1 = inlined_call_operand.vmem [shape: bf16[4,32,2048], index: 1, kind: input, shape index: {}]   ;;  %s1206_s2 = inlined_call_operand.vmem [shape: f32[3,1], index: 2, kind: input, shape index: {}]   ;;  %s1207_s3 = inlined_call_operand.vmem [shape: f32[4,3,2048], index: 3, kind: output, shape index: {}]  }
   0x1   :  { %s1075_s14 = smov 0  }
   0x2 LB: > { %s25_s15 = sadd.s32 1, %s1044_s13  ;;  %p918_p0 = scmp.ge.s32.totalorder %s1048_s14, 1  ;;  %s1048_s14 = sphi %s1075_s14, %s13_s14   ;;  %s1044_s13 = sphi %s1073_s13, %s1209_s13   ;;  %s1040_s12 = sphi %s1071_s12, %s1208_s12  }
   0x3   : > { %p27_p1 = scmp.ge.s32.totalorder %s25_s15, 4  ;;  %p167_p2 = scmp.lt.s32.totalorder %s1048_s14, 5 }
   0x5   : > { %s1211_s15 = smov (%p27_p1, %s25_s15), 0  ;;  %p168_p3 = pnand %p918_p0, %p167_p2 }
   0x6   : > { %p203_p4 = scmp.lt.s32.totalorder (!%p168_p3), %s1040_s12, 3 }
   0x7   : > { %171 = sbr.rel (%p168_p3) target bundleno = 266 (0x10a), region = 32 }
   0xc   : > { %v261_v0 = vld [vmem:[%s1206_s2] sm:$0x7]  ;;  %v1050_v1 = vmov 0   ;;  %s1213_s12 = smov (!%p203_p4, %s1040_s12), 3  ;;  %vm427_vm0 = vcmask 261120  }
   0xd   : > { %463 = vmatprep.mubr.bf16.mxu0 %v1050_v1  ;;  %504 = vmatprep.mubr.bf16.mxu1 %v1050_v1  ;;  %s966_s18 = sshll.u32 %s1213_s12, 8  ;;  %s919_s22 = sshll.u32 %s1213_s12, 1 }
   0xe   : > { %993 = vset.pattern.permute.xlu0 %v1050_v1  ;;  %s1101_s21 = scalar_lea.vmem %s1205_s1, %s966_s18  ;;  %s206_s25 = scalar_lea.vmem %s1204_s0, %s919_s22 }
   0xf   : > { %264 = vperm.xlu0 %993, %v261_v0   ;;  %v245_v2 = vld [vmem:[%s1101_s21 + $0x80] sm:$0xff]  ;;  %v246_v4 = vld [vmem:[%s1101_s21 + $0x88] sm:$0xff]  ;;  %v247_v16 = vld [vmem:[%s1101_s21 + $0x90] sm:$0xff]  ;;  %s967_s26 = sshll.u32 %s1213_s12, 6 }
  0x10   : > { %v253_v3 = vld [vmem:[%s1101_s21 + $0xc0] sm:$0xff]  ;;  %v254_v6 = vld [vmem:[%s1101_s21 + $0xc8] sm:$0xff]  ;;  %v255_v17 = vld [vmem:[%s1101_s21 + $0xd0] sm:$0xff]  ;;  %s1178_s29 = scalar_lea.vmem %s1207_s3, %s967_s26 }
  0x11   : > { %v941_v5 = vcombine.high %v245_v2, %v253_v3  ;;  %v940_v7 = vcombine.low %v245_v2, %v253_v3  ;;  %v229_v8 = vld [vmem:[%s1101_s21] sm:$0xff]  ;;  %v943_v10 = vcombine.high %v246_v4, %v254_v6  ;;  %v942_v11 = vcombine.low %v246_v4, %v254_v6  ;;  %v230_v13 = vld [vmem:[%s1101_s21 + $0x8] sm:$0xff]  ;;  %v248_v18 = vld [vmem:[%s1101_s21 + $0x98] sm:$0xff] }
  0x12   : > { %v237_v9 = vld [vmem:[%s1101_s21 + $0x40] sm:$0xff]  ;;  %v238_v14 = vld [vmem:[%s1101_s21 + $0x48] sm:$0xff]  ;;  %v256_v20 = vld [vmem:[%s1101_s21 + $0xd8] sm:$0xff]  ;;  %v945_v22 = vcombine.high %v247_v16, %v255_v17  ;;  %v944_v29 = vcombine.low %v247_v16, %v255_v17 }
  0x13   : > { %v925_v12 = vcombine.high %v229_v8, %v237_v9  ;;  %443 = vmatprep.subr.bf16.mxu0 %v941_v5  ;;  %v927_v15 = vcombine.high %v230_v13, %v238_v14  ;;  %484 = vmatprep.subr.bf16.mxu1 %v943_v10  ;;  %v924_v19 = vcombine.low %v229_v8, %v237_v9  ;;  %v231_v24 = vld [vmem:[%s1101_s21 + $0x10] sm:$0xff]  ;;  %v232_v26 = vld [vmem:[%s1101_s21 + $0x18] sm:$0xff]  ;;  %v1123_v28 = vld [vmem:[%s206_s25] sm:$0x3] }
  0x14   : > { %444 = vmatpush1.bf16.msra.mxu0 %v940_v7  ;;  %485 = vmatpush1.bf16.msra.mxu1 %v942_v11  ;;  %v926_v21 = vcombine.low %v230_v13, %v238_v14  ;;  %v947_v23 = vcombine.high %v248_v18, %v256_v20  ;;  %v239_v25 = vld [vmem:[%s1101_s21 + $0x50] sm:$0xff]  ;;  %v240_v27 = vld [vmem:[%s1101_s21 + $0x58] sm:$0xff]  ;;  %v946_v30 = vcombine.low %v248_v18, %v256_v20  ;;  %v249_v33 = vld [vmem:[%s1101_s21 + $0xa0] sm:$0xff] }
  0x15   : > { %445 = vmatprep.subr.bf16.mxu0 %v925_v12  ;;  %486 = vmatprep.subr.bf16.mxu1 %v927_v15  ;;  %v929_v31 = vcombine.high %v231_v24, %v239_v25  ;;  %v931_v32 = vcombine.high %v232_v26, %v240_v27  ;;  %v257_v34 = vld [vmem:[%s1101_s21 + $0xe0] sm:$0xff]  ;;  %v250_v35 = vld [vmem:[%s1101_s21 + $0xa8] sm:$0xff]  ;;  %v928_v37 = vcombine.low %v231_v24, %v239_v25  ;;  %v251_v49 = vld [vmem:[%s1101_s21 + $0xb0] sm:$0xff] }
  0x16   : > { %v258_v36 = vld [vmem:[%s1101_s21 + $0xe8] sm:$0xff]  ;;  %v930_v38 = vcombine.low %v232_v26, %v240_v27  ;;  %v949_v39 = vcombine.high %v249_v33, %v257_v34  ;;  %v233_v41 = vld [vmem:[%s1101_s21 + $0x20] sm:$0xff]  ;;  %v948_v45 = vcombine.low %v249_v33, %v257_v34  ;;  %v259_v50 = vld [vmem:[%s1101_s21 + $0xf0] sm:$0xff] }
  0x17   : > { %v951_v40 = vcombine.high %v250_v35, %v258_v36  ;;  %v241_v42 = vld [vmem:[%s1101_s21 + $0x60] sm:$0xff]  ;;  %v234_v43 = vld [vmem:[%s1101_s21 + $0x28] sm:$0xff]  ;;  %v950_v46 = vcombine.low %v250_v35, %v258_v36  ;;  %v252_v51 = vld [vmem:[%s1101_s21 + $0xb8] sm:$0xff]  ;;  %v953_v55 = vcombine.high %v251_v49, %v259_v50  ;;  %v952_v61 = vcombine.low %v251_v49, %v259_v50 }
  0x18   : > { %446 = vmatpush1.bf16.msra.mxu0 %v924_v19  ;;  %487 = vmatpush1.bf16.msra.mxu1 %v926_v21  ;;  %v242_v44 = vld [vmem:[%s1101_s21 + $0x68] sm:$0xff]  ;;  %v933_v47 = vcombine.high %v233_v41, %v241_v42  ;;  %v260_v52 = vld [vmem:[%s1101_s21 + $0xf8] sm:$0xff]  ;;  %v932_v53 = vcombine.low %v233_v41, %v241_v42  ;;  %v235_v57 = vld [vmem:[%s1101_s21 + $0x30] sm:$0xff] }
  0x19   : > { %525 = vmatprep.subr.bf16.mxu0 %v945_v22  ;;  %566 = vmatprep.subr.bf16.mxu1 %v947_v23  ;;  %v935_v48 = vcombine.high %v234_v43, %v242_v44  ;;  %v934_v54 = vcombine.low %v234_v43, %v242_v44  ;;  %v955_v56 = vcombine.high %v252_v51, %v260_v52  ;;  %v243_v58 = vld [vmem:[%s1101_s21 + $0x70] sm:$0xff]  ;;  %v236_v59 = vld [vmem:[%s1101_s21 + $0x38] sm:$0xff] }
  0x1a   : > { %v244_v60 = vld [vmem:[%s1101_s21 + $0x78] sm:$0xff]  ;;  %v954_v62 = vcombine.low %v252_v51, %v260_v52  ;;  %v937_v63 = vcombine.high %v235_v57, %v243_v58  ;;  %v936_v2 = vcombine.low %v235_v57, %v243_v58 }
  0x1b   : > { %956 = vmatmul.mubr.msk.bf16.vlgmr.msra.gmra.mxu0 %vm427_vm0, %v1123_v28  ;;  %957 = vmatmul.mubr.msk.bf16.vlgmr.msra.gmra.mxu1 %vm427_vm0, %v1123_v28  ;;  %v939_v0 = vcombine.high %v236_v59, %v244_v60  ;;  %v938_v3 = vcombine.low %v236_v59, %v244_v60 }
  0x1c   : > { %526 = vmatpush1.bf16.msra.mxu0 %v944_v29  ;;  %567 = vmatpush1.bf16.msra.mxu1 %v946_v30 }
  0x1d   : > { %527 = vmatprep.subr.bf16.mxu0 %v929_v31  ;;  %568 = vmatprep.subr.bf16.mxu1 %v931_v32 }
  0x1e   : > { %545 = vmatprep.mubr.bf16.mxu0 %v1050_v1  ;;  %586 = vmatprep.mubr.bf16.mxu1 %v1050_v1 }
  0x20   : > { %528 = vmatpush1.bf16.msra.mxu0 %v928_v37  ;;  %569 = vmatpush1.bf16.msra.mxu1 %v930_v38 }
  0x21   : > { %607 = vmatprep.subr.bf16.mxu0 %v949_v39  ;;  %648 = vmatprep.subr.bf16.mxu1 %v951_v40 }
  0x23   : > { %958 = vmatmul.mubr.msk.bf16.vlgmr.msra.gmra.mxu0 %vm427_vm0, %v1123_v28  ;;  %959 = vmatmul.mubr.msk.bf16.vlgmr.msra.gmra.mxu1 %vm427_vm0, %v1123_v28 }
  0x24   : > { %608 = vmatpush1.bf16.msra.mxu0 %v948_v45  ;;  %649 = vmatpush1.bf16.msra.mxu1 %v950_v46 }
  0x25   : > { %609 = vmatprep.subr.bf16.mxu0 %v933_v47  ;;  %650 = vmatprep.subr.bf16.mxu1 %v935_v48 }
  0x26   : > { %627 = vmatprep.mubr.bf16.mxu0 %v1050_v1  ;;  %668 = vmatprep.mubr.bf16.mxu1 %v1050_v1 }
  0x28   : > { %610 = vmatpush1.bf16.msra.mxu0 %v932_v53  ;;  %651 = vmatpush1.bf16.msra.mxu1 %v934_v54 }
  0x29   : > { %689 = vmatprep.subr.bf16.mxu0 %v953_v55  ;;  %730 = vmatprep.subr.bf16.mxu1 %v955_v56 }
  0x2b   : > { %960 = vmatmul.mubr.msk.bf16.vlgmr.msra.gmra.mxu0 %vm427_vm0, %v1123_v28  ;;  %961 = vmatmul.mubr.msk.bf16.vlgmr.msra.gmra.mxu1 %vm427_vm0, %v1123_v28 }
  0x2c   : > { %690 = vmatpush1.bf16.msra.mxu0 %v952_v61  ;;  %731 = vmatpush1.bf16.msra.mxu1 %v954_v62 }
  0x2d   : > { %691 = vmatprep.subr.bf16.mxu0 %v937_v63  ;;  %732 = vmatprep.subr.bf16.mxu1 %v939_v0 }
  0x2e   : > { %709 = vmatprep.mubr.bf16.mxu0 %v1050_v1  ;;  %750 = vmatprep.mubr.bf16.mxu1 %v1050_v1 }
  0x30   : > { %692 = vmatpush1.bf16.msra.mxu0 %v936_v2  ;;  %733 = vmatpush1.bf16.msra.mxu1 %v938_v3 }
  0x33   : > { %962 = vmatmul.mubr.msk.bf16.vlgmr.msra.gmra.mxu0 %vm427_vm0, %v1123_v28  ;;  %963 = vmatmul.mubr.msk.bf16.vlgmr.msra.gmra.mxu1 %vm427_vm0, %v1123_v28 }
  0x8a   : > { %v1163_v4 = vpop.permute.xlu0 %264 }
  0xdb   : > { %v465_v5 = vpop.f32.mrf.mxu0  ;;  %v506_v6 = vpop.f32.mrf.mxu1 }
  0xdc   : > { %v466_v7 = vadd.f32 %v465_v5, %v1163_v4  ;;  %v507_v9 = vadd.f32 %v506_v6, %v1163_v4 }
  0xdd   : > { %v467_v8 = vpop.f32.mrf.mxu0  ;;  %v508_v1 = vpop.f32.mrf.mxu1 }
  0xde   : > { %v468_v10 = vadd.f32 %v467_v8, %v1163_v4  ;;  %994 = vtanh.f32 %v466_v7  ;;  %v509_v11 = vadd.f32 %v508_v1, %v1163_v4 }
  0xdf   : > { %996 = vtanh.f32 %v507_v9  ;;  %v469_v12 = vpop.f32.mrf.mxu0  ;;  %v510_v13 = vpop.f32.mrf.mxu1 }
  0xe0   : > { %998 = vtanh.f32 %v468_v10 }
  0xe1   : > { %1000 = vtanh.f32 %v509_v11  ;;  %v470_v14 = vpop.f32.mrf.mxu0  ;;  %v511_v15 = vpop.f32.mrf.mxu1 }
  0xe3   : > { %v547_v16 = vpop.f32.mrf.mxu0  ;;  %v588_v18 = vpop.f32.mrf.mxu1 }
  0xe4   : > { %v548_v17 = vadd.f32 %v547_v16, %v1163_v4  ;;  %v589_v19 = vadd.f32 %v588_v18, %v1163_v4 }
  0xe5   : > { %v549_v20 = vpop.f32.mrf.mxu0  ;;  %v590_v22 = vpop.f32.mrf.mxu1 }
  0xe6   : > { %1002 = vtanh.f32 %v548_v17  ;;  %v550_v21 = vadd.f32 %v549_v20, %v1163_v4  ;;  %v591_v23 = vadd.f32 %v590_v22, %v1163_v4 }
  0xe7   : > { %1004 = vtanh.f32 %v589_v19  ;;  %v551_v24 = vpop.f32.mrf.mxu0  ;;  %v592_v25 = vpop.f32.mrf.mxu1 }
  0xe8   : > { %1006 = vtanh.f32 %v550_v21 }
  0xe9   : > { %1008 = vtanh.f32 %v591_v23  ;;  %v552_v26 = vpop.f32.mrf.mxu0  ;;  %v593_v27 = vpop.f32.mrf.mxu1 }
  0xeb   : > { %v995_v28 = vpop.eup %994  ;;  %v629_v29 = vpop.f32.mrf.mxu0 }
  0xec   : > { %v997_v30 = vpop.eup %996  ;;  %v630_v31 = vadd.f32 %v629_v29, %v1163_v4  ;;  %v670_v32 = vpop.f32.mrf.mxu1 }
  0xed   : > { %v999_v33 = vpop.eup %998  ;;  %v671_v34 = vadd.f32 %v670_v32, %v1163_v4  ;;  %v631_v35 = vpop.f32.mrf.mxu0 }
  0xee   : > { %v1001_v36 = vpop.eup %1000  ;;  %v791_v37 = vcombine.low %v995_v28, %v999_v33  ;;  %1010 = vtanh.f32 %v630_v31  ;;  %v632_v38 = vadd.f32 %v631_v35, %v1163_v4  ;;  %v672_v39 = vpop.f32.mrf.mxu1 }
  0xef   : > { %v792_v40 = vcombine.low %v997_v30, %v1001_v36  ;;  %1012 = vtanh.f32 %v671_v34  ;;  %v673_v41 = vadd.f32 %v672_v39, %v1163_v4  ;;  %v633_v42 = vpop.f32.mrf.mxu0 }
  0xf0   : > { %807 = vst [vmem:[%s1178_s29] sm:$0x77] %v791_v37  ;;  %1014 = vtanh.f32 %v632_v38  ;;  %v674_v43 = vpop.f32.mrf.mxu1 }
  0xf1   : > { %808 = vst [vmem:[%s1178_s29 + $0x8] sm:$0x77] %v792_v40  ;;  %1016 = vtanh.f32 %v673_v41  ;;  %v634_v44 = vpop.f32.mrf.mxu0 }
  0xf2   : > { %v675_v45 = vpop.f32.mrf.mxu1 }
  0xf3   : > { %v1003_v46 = vpop.eup %1002  ;;  %v711_v47 = vpop.f32.mrf.mxu0 }
  0xf4   : > { %v1005_v48 = vpop.eup %1004  ;;  %v712_v49 = vadd.f32 %v711_v47, %v1163_v4  ;;  %v752_v50 = vpop.f32.mrf.mxu1 }
  0xf5   : > { %v1007_v51 = vpop.eup %1006  ;;  %v753_v52 = vadd.f32 %v752_v50, %v1163_v4  ;;  %v713_v53 = vpop.f32.mrf.mxu0 }
  0xf6   : > { %v1009_v54 = vpop.eup %1008  ;;  %v793_v55 = vcombine.low %v1003_v46, %v1007_v51  ;;  %1018 = vtanh.f32 %v712_v49  ;;  %v714_v56 = vadd.f32 %v713_v53, %v1163_v4  ;;  %v754_v57 = vpop.f32.mrf.mxu1 }
  0xf7   : > { %v794_v58 = vcombine.low %v1005_v48, %v1009_v54  ;;  %1020 = vtanh.f32 %v753_v52  ;;  %v755_v59 = vadd.f32 %v754_v57, %v1163_v4  ;;  %v715_v60 = vpop.f32.mrf.mxu0 }
  0xf8   : > { %809 = vst [vmem:[%s1178_s29 + $0x10] sm:$0x77] %v793_v55  ;;  %1022 = vtanh.f32 %v714_v56  ;;  %v756_v61 = vpop.f32.mrf.mxu1 }
  0xf9   : > { %810 = vst [vmem:[%s1178_s29 + $0x18] sm:$0x77] %v794_v58  ;;  %1024 = vtanh.f32 %v755_v59  ;;  %v716_v62 = vpop.f32.mrf.mxu0 }
  0xfa   : > { %v757_v63 = vpop.f32.mrf.mxu1 }
  0xfb   : > { %v1011_v0 = vpop.eup %1010 }
  0xfc   : > { %v1013_v2 = vpop.eup %1012 }
  0xfd   : > { %v1015_v3 = vpop.eup %1014 }
  0xfe   : > { %v1017_v5 = vpop.eup %1016  ;;  %v795_v6 = vcombine.low %v1011_v0, %v1015_v3 }
  0xff   : > { %v796_v7 = vcombine.low %v1013_v2, %v1017_v5 }
 0x100   : > { %811 = vst [vmem:[%s1178_s29 + $0x20] sm:$0x77] %v795_v6 }
 0x101   : > { %812 = vst [vmem:[%s1178_s29 + $0x28] sm:$0x77] %v796_v7 }
 0x103   : > { %v1019_v4 = vpop.eup %1018 }
 0x104   : > { %v1021_v8 = vpop.eup %1020 }
 0x105   : > { %v1023_v9 = vpop.eup %1022 }
 0x106   : > { %v1025_v10 = vpop.eup %1024  ;;  %v797_v1 = vcombine.low %v1019_v4, %v1023_v9 }
 0x107   : > { %v798_v11 = vcombine.low %v1021_v8, %v1025_v10 }
 0x108   : > { %813 = vst [vmem:[%s1178_s29 + $0x30] sm:$0x77] %v797_v1 }
 0x109   : > { %814 = vst [vmem:[%s1178_s29 + $0x38] sm:$0x77] %v798_v11 }
 0x10a PF: > { %s13_s14 = sadd.s32 1, %s1048_s14   ;;  %s1208_s12 = smov %s1044_s13 }
 0x10b   : > { %p10_p5 = scmp.ge.s32.totalorder %s13_s14, 6   ;;  %s1209_s13 = smov %s1211_s15 }
 0x10d   :  { %12 = sbr.rel (!%p10_p5) target bundleno = 2 (0x2), region = 65 }

</bundles_post_ra>
